<compile_context>
chip_gen: v5e
topology: v5e:2x2
jax: 0.10.0
libtpu: 0.0.40
codegen_flags: <defaults>
</compile_context>

<pallas_src>
import functools

import jax
import jax.numpy as jnp
from jax import lax
from jax.experimental import pallas as pl
from jax.experimental.pallas import tpu as pltpu


def bilstm_kernel(emb_ref, wx_ref, wh_ref, b_ref, out_ref, gx_ref, hstage_ref,
                  *, T, B, H, GP):
    """Fused bidirectional LSTM over the whole (small) sequence.

    emb_ref:    (T*B, 2E)   f32, row block t = [emb[t] | emb[T-1-t]] (time-major).
    wx_ref:     (2E, 4*GP)  f32, block-diag fused input weights, gate blocks
                            [i | f | o | g], each block = [fwd(H) | bwd(H) | 0].
    wh_ref:     (GP, 4*GP)  f32, block-diag fused hidden weights (same layout,
                            rows 0:H drive fwd cols, rows H:2H bwd cols).
    b_ref:      (1, 4*GP)   f32, fused (b_ih + b_hh) biases (0 in pad lanes).
    out_ref:    (T, B, GP)  f32, [..., :H]=fwd hidden, [..., H:2H]=bwd hidden.
    gx_ref:     (T*B, 4*GP) f32 scratch, hoisted input projections.
    hstage_ref: (T, B, GP)  f32 scratch, per-step fused hidden state.
    """
    # (1) Hoisted input projection: one MXU call for all timesteps & both dirs.
    gx_ref[...] = (
        jnp.dot(emb_ref[...], wx_ref[...], preferred_element_type=jnp.float32)
        + b_ref[...])

    wh = wh_ref[...]
    h = jnp.zeros((B, GP), jnp.float32)   # [h_fwd | h_bwd | 0]
    c = jnp.zeros((B, GP), jnp.float32)   # [c_fwd | c_bwd | 0]

    # (2) Serial recurrence.  Static Python loop == full unroll with static
    # slice indices.  All slice boundaries are multiples of GP=128 lanes.
    for t in range(T):
        gates = gx_ref[pl.ds(t * B, B), :] + jnp.dot(
            h, wh, preferred_element_type=jnp.float32)       # (B, 4*GP)
        sig = jax.nn.sigmoid(gates[:, :3 * GP])               # [i | f | o]
        g = jnp.tanh(gates[:, 3 * GP:])                       # [g]
        c = sig[:, GP:2 * GP] * c + sig[:, 0:GP] * g          # f*c + i*g
        h = sig[:, 2 * GP:3 * GP] * jnp.tanh(c)               # o*tanh(c)
        hstage_ref[t] = h                                     # lane-dense store

    # (3) Finalize (off the critical path): out[t] = [fwd(t) | bwd(t) | 0].
    # bwd hidden for time t was produced at loop step T-1-t; pad lanes are 0.
    fwd_mask = lax.broadcasted_iota(jnp.int32, (B, GP), 1) < H
    for t in range(T):
        out_ref[t] = jnp.where(fwd_mask, hstage_ref[t], hstage_ref[T - 1 - t])


def _split_gates(w, H):
    """Split PyTorch (4H, ...) gate-stacked param into (i, f, g, o) blocks."""
    return w[0:H], w[H:2 * H], w[2 * H:3 * H], w[3 * H:4 * H]


def _fuse_lstm_params(params, H, GP):
    """Fused weights: gate blocks [i|f|o|g], each GP lanes = [fwd|bwd|0-pad]."""
    f32 = jnp.float32
    E = params["w_ih_f"].shape[1]
    pad = GP - 2 * H
    assert pad >= 0

    xi_f, xf_f, xg_f, xo_f = _split_gates(params["w_ih_f"].astype(f32), H)
    xi_b, xf_b, xg_b, xo_b = _split_gates(params["w_ih_b"].astype(f32), H)
    hi_f, hf_f, hg_f, ho_f = _split_gates(params["w_hh_f"].astype(f32), H)
    hi_b, hf_b, hg_b, ho_b = _split_gates(params["w_hh_b"].astype(f32), H)
    bi_f, bf_f, bg_f, bo_f = _split_gates(
        (params["b_ih_f"] + params["b_hh_f"]).astype(f32), H)
    bi_b, bf_b, bg_b, bo_b = _split_gates(
        (params["b_ih_b"] + params["b_hh_b"]).astype(f32), H)

    def wx_block(wf, wb):
        # (2E, GP): rows 0:E (emb[t]) feed fwd cols, rows E:2E (emb[T-1-t]) bwd cols.
        top = jnp.concatenate([wf.T, jnp.zeros((E, H + pad), f32)], axis=1)
        bot = jnp.concatenate(
            [jnp.zeros((E, H), f32), wb.T, jnp.zeros((E, pad), f32)], axis=1)
        return jnp.concatenate([top, bot], axis=0)

    def wh_block(wf, wb):
        # (GP, GP): rows 0:H (h_fwd) feed fwd cols, rows H:2H (h_bwd) bwd cols.
        rf = jnp.concatenate([wf.T, jnp.zeros((H, H + pad), f32)], axis=1)
        rb = jnp.concatenate(
            [jnp.zeros((H, H), f32), wb.T, jnp.zeros((H, pad), f32)], axis=1)
        rz = jnp.zeros((pad, GP), f32)
        return jnp.concatenate([rf, rb, rz], axis=0)

    def b_block(bf, bb):
        return jnp.concatenate([bf, bb, jnp.zeros((pad,), f32)])

    # Gate block order (i, f, o, g): one contiguous 3*GP sigmoid, one GP tanh.
    gates = [(xi_f, xi_b, hi_f, hi_b, bi_f, bi_b),
             (xf_f, xf_b, hf_f, hf_b, bf_f, bf_b),
             (xo_f, xo_b, ho_f, ho_b, bo_f, bo_b),
             (xg_f, xg_b, hg_f, hg_b, bg_f, bg_b)]
    wx = jnp.concatenate([wx_block(gi[0], gi[1]) for gi in gates], axis=1)
    wh = jnp.concatenate([wh_block(gi[2], gi[3]) for gi in gates], axis=1)
    b = jnp.concatenate([b_block(gi[4], gi[5]) for gi in gates]).reshape(1, 4 * GP)
    return wx, wh, b


def make_encoder(params, hidden_size):
    """Builds a jitted Encoder.forward (modified=False); weight fusion runs once."""
    H = hidden_size
    GP = max(128, -(-2 * H // 128) * 128)            # padded gate-block width
    wx, wh, b = _fuse_lstm_params(params, H, GP)     # hoisted out of per-call path
    emb_table = params["embedding"].astype(jnp.float32)
    E = emb_table.shape[1]

    @jax.jit
    def forward(x):
        B, T = x.shape
        Bp = -(-B // 8) * 8                          # pad batch to sublane multiple
        xt = x.T                                     # time-major gather, no transpose
        if Bp != B:
            xt = jnp.pad(xt, ((0, 0), (0, Bp - B)))
        emb_tm = emb_table[xt]                       # (T, Bp, E)
        # Bake the backward-direction time reversal into the projection input.
        emb2 = jnp.concatenate([emb_tm, emb_tm[::-1]],
                               axis=-1).reshape(T * Bp, 2 * E)   # (T*Bp, 2E)

        kernel = functools.partial(bilstm_kernel, T=T, B=Bp, H=H, GP=GP)
        vmem = pl.BlockSpec(memory_space=pltpu.MemorySpace.VMEM)
        out_p = pl.pallas_call(
            kernel,
            out_shape=jax.ShapeDtypeStruct((T, Bp, GP), jnp.float32),
            in_specs=[vmem] * 4,
            out_specs=vmem,
            scratch_shapes=[pltpu.VMEM((T * Bp, 4 * GP), jnp.float32),
                            pltpu.VMEM((T, Bp, GP), jnp.float32)],
        )(emb2, wx, wh, b)

        out = jnp.transpose(out_p[:, :B, :2 * H], (1, 0, 2))    # (B, T, 2H)
        enc_hidden = out_p[0, :B, H:2 * H][None]                # (1, B, H)
        # TODO(synk): modified=True branch (fc_hidden over concatenated hidden
        # states) is not implemented; as written in the PyTorch reference it
        # would raise a shape error anyway.
        return out, enc_hidden

    return forward


def encoder_reference(x, params, hidden_size):
    """Pure-JAX reference for verification (same math, no Pallas)."""
    H = hidden_size
    emb = params["embedding"][x]
    B, T, _ = emb.shape

    def cell(x_t, h, c, w_ih, w_hh, b_ih, b_hh):
        gates = x_t @ w_ih.T + b_ih + h @ w_hh.T + b_hh
        i = jax.nn.sigmoid(gates[:, :H])
        f = jax.nn.sigmoid(gates[:, H:2 * H])
        g = jnp.tanh(gates[:, 2 * H:3 * H])
        o = jax.nn.sigmoid(gates[:, 3 * H:])
        c = f * c + i * g
        return o * jnp.tanh(c), c

    h = c = jnp.zeros((B, H), jnp.float32)
    outs_f = []
    for t in range(T):
        h, c = cell(emb[:, t], h, c, params["w_ih_f"], params["w_hh_f"],
                    params["b_ih_f"], params["b_hh_f"])
        outs_f.append(h)
    h = c = jnp.zeros((B, H), jnp.float32)
    outs_b = [None] * T
    for t in range(T - 1, -1, -1):
        h, c = cell(emb[:, t], h, c, params["w_ih_b"], params["w_hh_b"],
                    params["b_ih_b"], params["b_hh_b"])
        outs_b[t] = h
    out = jnp.concatenate([jnp.stack(outs_f, 1), jnp.stack(outs_b, 1)], axis=-1)
    return out, out[:, 0, H:][None, ...]


def init_params(key, vocab_size, embedding_dim, hidden_size):
    E, H = embedding_dim, hidden_size
    ks = jax.random.split(key, 10)
    bound = 1.0 / float(H) ** 0.5
    u = lambda k, shape: jax.random.uniform(k, shape, jnp.float32, -bound, bound)
    return {
        "embedding": jax.random.normal(ks[0], (vocab_size, E), jnp.float32),
        "w_ih_f": u(ks[1], (4 * H, E)),
        "w_hh_f": u(ks[2], (4 * H, H)),
        "b_ih_f": u(ks[3], (4 * H,)),
        "b_hh_f": u(ks[4], (4 * H,)),
        "w_ih_b": u(ks[5], (4 * H, E)),
        "w_hh_b": u(ks[6], (4 * H, H)),
        "b_ih_b": u(ks[7], (4 * H,)),
        "b_hh_b": u(ks[8], (4 * H,)),
    }


if __name__ == "__main__":
    vocab_size, embedding_dim, hidden_size = 50, 16, 32
    batch, Tx = 2, 8

    key = jax.random.PRNGKey(0)
    k_params, k_x = jax.random.split(key)
    params = init_params(k_params, vocab_size, embedding_dim, hidden_size)
    x = jax.random.randint(k_x, (batch, Tx), 0, vocab_size, dtype=jnp.int32)

    encoder = make_encoder(params, hidden_size)   # weight fusion happens here, once
    out, enc_hidden = encoder(x)
    out = jax.block_until_ready(out)
    enc_hidden = jax.block_until_ready(enc_hidden)

    assert out.shape == (batch, Tx, 2 * hidden_size)
    assert enc_hidden.shape == (1, batch, hidden_size)

    out_ref, enc_ref = encoder_reference(x, params, hidden_size)
    # 1e-3 tolerance absorbs matmul-reordering / MXU pass differences; wiring
    # errors would show up at O(0.1) magnitude.
    assert jnp.allclose(out, out_ref, atol=1e-3), "out mismatch vs reference"
    assert jnp.allclose(enc_hidden, enc_ref, atol=1e-3), "enc_hidden mismatch"

    print("KERNEL_OK")
</pallas_src>

<mosaic_0001>
module attributes {stable_mosaic.version = 11 : i64} {
  func.func @bilstm_kernel(%arg0: memref<64x32xf32, #tpu.memory_space<vmem>>, %arg1: memref<32x512xf32, #tpu.memory_space<vmem>>, %arg2: memref<128x512xf32, #tpu.memory_space<vmem>>, %arg3: memref<1x512xf32, #tpu.memory_space<vmem>>, %arg4: memref<8x8x128xf32, #tpu.memory_space<vmem>>, %arg5: memref<64x512xf32, #tpu.memory_space<vmem>>, %arg6: memref<8x8x128xf32, #tpu.memory_space<vmem>>) attributes {dimension_semantics = [], scalar_prefetch = 0 : i64, scratch_operands = 2 : i64, tpu.core_type = #tpu.core_type<tc>} {
    %c0 = arith.constant 0 : index
    %c0_0 = arith.constant 0 : index
    %0 = vector.load %arg0[%c0, %c0_0] : memref<64x32xf32, #tpu.memory_space<vmem>>, vector<64x32xf32>
    %c0_1 = arith.constant 0 : index
    %c0_2 = arith.constant 0 : index
    %1 = vector.load %arg1[%c0_1, %c0_2] : memref<32x512xf32, #tpu.memory_space<vmem>>, vector<32x512xf32>
    %cst = arith.constant dense<0.000000e+00> : vector<64x512xf32>
    %2 = tpu.matmul %0, %1, %cst {dimension_numbers = #tpu.dot_dimension_numbers<[1], [0], [0], [1], [0, 0, 1, 1], [], []>} : vector<64x32xf32>, vector<32x512xf32>, vector<64x512xf32> -> vector<64x512xf32>
    %c0_3 = arith.constant 0 : index
    %c0_4 = arith.constant 0 : index
    %3 = vector.load %arg3[%c0_3, %c0_4] : memref<1x512xf32, #tpu.memory_space<vmem>>, vector<1x512xf32>
    %4 = vector.broadcast %3 : vector<1x512xf32> to vector<64x512xf32>
    %5 = arith.addf %2, %4 : vector<64x512xf32>
    %c0_5 = arith.constant 0 : index
    %c0_6 = arith.constant 0 : index
    %6 = vector.load %arg5[%c0_5, %c0_6] : memref<64x512xf32, #tpu.memory_space<vmem>>, vector<64x512xf32>
    tpu.vector_store %arg5[%c0_5, %c0_6], %5 {strides = array<i32>} : memref<64x512xf32, #tpu.memory_space<vmem>>, vector<64x512xf32>,
    %c0_7 = arith.constant 0 : index
    %c0_8 = arith.constant 0 : index
    %7 = vector.load %arg2[%c0_7, %c0_8] : memref<128x512xf32, #tpu.memory_space<vmem>>, vector<128x512xf32>
    %cst_9 = arith.constant 0.000000e+00 : f32
    %8 = vector.broadcast %cst_9 : f32 to vector<8x128xf32>
    %cst_10 = arith.constant 0.000000e+00 : f32
    %9 = vector.broadcast %cst_10 : f32 to vector<8x128xf32>
    %c0_11 = arith.constant 0 : index
    %c0_12 = arith.constant 0 : index
    %10 = vector.load %arg5[%c0_11, %c0_12] : memref<64x512xf32, #tpu.memory_space<vmem>>, vector<8x512xf32>
    %cst_13 = arith.constant dense<0.000000e+00> : vector<8x512xf32>
    %11 = tpu.matmul %8, %7, %cst_13 {dimension_numbers = #tpu.dot_dimension_numbers<[1], [0], [0], [1], [0, 0, 1, 1], [], []>} : vector<8x128xf32>, vector<128x512xf32>, vector<8x512xf32> -> vector<8x512xf32>
    %12 = arith.addf %10, %11 : vector<8x512xf32>
    %13 = vector.extract_strided_slice %12 {offsets = [0, 0], sizes = [8, 384], strides = [1, 1]} : vector<8x512xf32> to vector<8x384xf32>
    %14 = arith.negf %13 : vector<8x384xf32>
    %15 = math.exp %14 : vector<8x384xf32>
    %cst_14 = arith.constant 1.000000e+00 : f32
    %16 = vector.broadcast %cst_14 : f32 to vector<8x384xf32>
    %17 = arith.addf %16, %15 : vector<8x384xf32>
    %18 = arith.divf %16, %17 : vector<8x384xf32>
    %19 = vector.extract_strided_slice %12 {offsets = [0, 384], sizes = [8, 128], strides = [1, 1]} : vector<8x512xf32> to vector<8x128xf32>
    %20 = math.tanh %19 : vector<8x128xf32>
    %21 = vector.extract_strided_slice %18 {offsets = [0, 128], sizes = [8, 128], strides = [1, 1]} : vector<8x384xf32> to vector<8x128xf32>
    %22 = arith.mulf %21, %9 : vector<8x128xf32>
    %23 = vector.extract_strided_slice %18 {offsets = [0, 0], sizes = [8, 128], strides = [1, 1]} : vector<8x384xf32> to vector<8x128xf32>
    %24 = arith.mulf %23, %20 : vector<8x128xf32>
    %25 = arith.addf %22, %24 : vector<8x128xf32>
    %26 = vector.extract_strided_slice %18 {offsets = [0, 256], sizes = [8, 128], strides = [1, 1]} : vector<8x384xf32> to vector<8x128xf32>
    %27 = math.tanh %25 : vector<8x128xf32>
    %28 = arith.mulf %26, %27 : vector<8x128xf32>
    %c0_15 = arith.constant 0 : index
    %c0_16 = arith.constant 0 : index
    %c0_17 = arith.constant 0 : index
    %29 = vector.load %arg6[%c0_15, %c0_16, %c0_17] : memref<8x8x128xf32, #tpu.memory_space<vmem>>, vector<1x8x128xf32>
    %30 = vector.shape_cast %29 : vector<1x8x128xf32> to vector<8x128xf32>
    %31 = vector.shape_cast %28 : vector<8x128xf32> to vector<1x8x128xf32>
    tpu.vector_store %arg6[%c0_15, %c0_16, %c0_17], %31 {strides = array<i32>} : memref<8x8x128xf32, #tpu.memory_space<vmem>>, vector<1x8x128xf32>,
    %c8 = arith.constant 8 : index
    %c0_18 = arith.constant 0 : index
    %32 = vector.load %arg5[%c8, %c0_18] : memref<64x512xf32, #tpu.memory_space<vmem>>, vector<8x512xf32>
    %cst_19 = arith.constant dense<0.000000e+00> : vector<8x512xf32>
    %33 = tpu.matmul %28, %7, %cst_19 {dimension_numbers = #tpu.dot_dimension_numbers<[1], [0], [0], [1], [0, 0, 1, 1], [], []>} : vector<8x128xf32>, vector<128x512xf32>, vector<8x512xf32> -> vector<8x512xf32>
    %34 = arith.addf %32, %33 : vector<8x512xf32>
    %35 = vector.extract_strided_slice %34 {offsets = [0, 0], sizes = [8, 384], strides = [1, 1]} : vector<8x512xf32> to vector<8x384xf32>
    %36 = arith.negf %35 : vector<8x384xf32>
    %37 = math.exp %36 : vector<8x384xf32>
    %cst_20 = arith.constant 1.000000e+00 : f32
    %38 = vector.broadcast %cst_20 : f32 to vector<8x384xf32>
    %39 = arith.addf %38, %37 : vector<8x384xf32>
    %40 = arith.divf %38, %39 : vector<8x384xf32>
    %41 = vector.extract_strided_slice %34 {offsets = [0, 384], sizes = [8, 128], strides = [1, 1]} : vector<8x512xf32> to vector<8x128xf32>
    %42 = math.tanh %41 : vector<8x128xf32>
    %43 = vector.extract_strided_slice %40 {offsets = [0, 128], sizes = [8, 128], strides = [1, 1]} : vector<8x384xf32> to vector<8x128xf32>
    %44 = arith.mulf %43, %25 : vector<8x128xf32>
    %45 = vector.extract_strided_slice %40 {offsets = [0, 0], sizes = [8, 128], strides = [1, 1]} : vector<8x384xf32> to vector<8x128xf32>
    %46 = arith.mulf %45, %42 : vector<8x128xf32>
    %47 = arith.addf %44, %46 : vector<8x128xf32>
    %48 = vector.extract_strided_slice %40 {offsets = [0, 256], sizes = [8, 128], strides = [1, 1]} : vector<8x384xf32> to vector<8x128xf32>
    %49 = math.tanh %47 : vector<8x128xf32>
    %50 = arith.mulf %48, %49 : vector<8x128xf32>
    %c1 = arith.constant 1 : index
    %c0_21 = arith.constant 0 : index
    %c0_22 = arith.constant 0 : index
    %51 = vector.load %arg6[%c1, %c0_21, %c0_22] : memref<8x8x128xf32, #tpu.memory_space<vmem>>, vector<1x8x128xf32>
    %52 = vector.shape_cast %51 : vector<1x8x128xf32> to vector<8x128xf32>
    %53 = vector.shape_cast %50 : vector<8x128xf32> to vector<1x8x128xf32>
    tpu.vector_store %arg6[%c1, %c0_21, %c0_22], %53 {strides = array<i32>} : memref<8x8x128xf32, #tpu.memory_space<vmem>>, vector<1x8x128xf32>,
    %c16 = arith.constant 16 : index
    %c0_23 = arith.constant 0 : index
    %54 = vector.load %arg5[%c16, %c0_23] : memref<64x512xf32, #tpu.memory_space<vmem>>, vector<8x512xf32>
    %cst_24 = arith.constant dense<0.000000e+00> : vector<8x512xf32>
    %55 = tpu.matmul %50, %7, %cst_24 {dimension_numbers = #tpu.dot_dimension_numbers<[1], [0], [0], [1], [0, 0, 1, 1], [], []>} : vector<8x128xf32>, vector<128x512xf32>, vector<8x512xf32> -> vector<8x512xf32>
    %56 = arith.addf %54, %55 : vector<8x512xf32>
    %57 = vector.extract_strided_slice %56 {offsets = [0, 0], sizes = [8, 384], strides = [1, 1]} : vector<8x512xf32> to vector<8x384xf32>
    %58 = arith.negf %57 : vector<8x384xf32>
    %59 = math.exp %58 : vector<8x384xf32>
    %cst_25 = arith.constant 1.000000e+00 : f32
    %60 = vector.broadcast %cst_25 : f32 to vector<8x384xf32>
    %61 = arith.addf %60, %59 : vector<8x384xf32>
    %62 = arith.divf %60, %61 : vector<8x384xf32>
    %63 = vector.extract_strided_slice %56 {offsets = [0, 384], sizes = [8, 128], strides = [1, 1]} : vector<8x512xf32> to vector<8x128xf32>
    %64 = math.tanh %63 : vector<8x128xf32>
    %65 = vector.extract_strided_slice %62 {offsets = [0, 128], sizes = [8, 128], strides = [1, 1]} : vector<8x384xf32> to vector<8x128xf32>
    %66 = arith.mulf %65, %47 : vector<8x128xf32>
    %67 = vector.extract_strided_slice %62 {offsets = [0, 0], sizes = [8, 128], strides = [1, 1]} : vector<8x384xf32> to vector<8x128xf32>
    %68 = arith.mulf %67, %64 : vector<8x128xf32>
    %69 = arith.addf %66, %68 : vector<8x128xf32>
    %70 = vector.extract_strided_slice %62 {offsets = [0, 256], sizes = [8, 128], strides = [1, 1]} : vector<8x384xf32> to vector<8x128xf32>
    %71 = math.tanh %69 : vector<8x128xf32>
    %72 = arith.mulf %70, %71 : vector<8x128xf32>
    %c2 = arith.constant 2 : index
    %c0_26 = arith.constant 0 : index
    %c0_27 = arith.constant 0 : index
    %73 = vector.load %arg6[%c2, %c0_26, %c0_27] : memref<8x8x128xf32, #tpu.memory_space<vmem>>, vector<1x8x128xf32>
    %74 = vector.shape_cast %73 : vector<1x8x128xf32> to vector<8x128xf32>
    %75 = vector.shape_cast %72 : vector<8x128xf32> to vector<1x8x128xf32>
    tpu.vector_store %arg6[%c2, %c0_26, %c0_27], %75 {strides = array<i32>} : memref<8x8x128xf32, #tpu.memory_space<vmem>>, vector<1x8x128xf32>,
    %c24 = arith.constant 24 : index
    %c0_28 = arith.constant 0 : index
    %76 = vector.load %arg5[%c24, %c0_28] : memref<64x512xf32, #tpu.memory_space<vmem>>, vector<8x512xf32>
    %cst_29 = arith.constant dense<0.000000e+00> : vector<8x512xf32>
    %77 = tpu.matmul %72, %7, %cst_29 {dimension_numbers = #tpu.dot_dimension_numbers<[1], [0], [0], [1], [0, 0, 1, 1], [], []>} : vector<8x128xf32>, vector<128x512xf32>, vector<8x512xf32> -> vector<8x512xf32>
    %78 = arith.addf %76, %77 : vector<8x512xf32>
    %79 = vector.extract_strided_slice %78 {offsets = [0, 0], sizes = [8, 384], strides = [1, 1]} : vector<8x512xf32> to vector<8x384xf32>
    %80 = arith.negf %79 : vector<8x384xf32>
    %81 = math.exp %80 : vector<8x384xf32>
    %cst_30 = arith.constant 1.000000e+00 : f32
    %82 = vector.broadcast %cst_30 : f32 to vector<8x384xf32>
    %83 = arith.addf %82, %81 : vector<8x384xf32>
    %84 = arith.divf %82, %83 : vector<8x384xf32>
    %85 = vector.extract_strided_slice %78 {offsets = [0, 384], sizes = [8, 128], strides = [1, 1]} : vector<8x512xf32> to vector<8x128xf32>
    %86 = math.tanh %85 : vector<8x128xf32>
    %87 = vector.extract_strided_slice %84 {offsets = [0, 128], sizes = [8, 128], strides = [1, 1]} : vector<8x384xf32> to vector<8x128xf32>
    %88 = arith.mulf %87, %69 : vector<8x128xf32>
    %89 = vector.extract_strided_slice %84 {offsets = [0, 0], sizes = [8, 128], strides = [1, 1]} : vector<8x384xf32> to vector<8x128xf32>
    %90 = arith.mulf %89, %86 : vector<8x128xf32>
    %91 = arith.addf %88, %90 : vector<8x128xf32>
    %92 = vector.extract_strided_slice %84 {offsets = [0, 256], sizes = [8, 128], strides = [1, 1]} : vector<8x384xf32> to vector<8x128xf32>
    %93 = math.tanh %91 : vector<8x128xf32>
    %94 = arith.mulf %92, %93 : vector<8x128xf32>
    %c3 = arith.constant 3 : index
    %c0_31 = arith.constant 0 : index
    %c0_32 = arith.constant 0 : index
    %95 = vector.load %arg6[%c3, %c0_31, %c0_32] : memref<8x8x128xf32, #tpu.memory_space<vmem>>, vector<1x8x128xf32>
    %96 = vector.shape_cast %95 : vector<1x8x128xf32> to vector<8x128xf32>
    %97 = vector.shape_cast %94 : vector<8x128xf32> to vector<1x8x128xf32>
    tpu.vector_store %arg6[%c3, %c0_31, %c0_32], %97 {strides = array<i32>} : memref<8x8x128xf32, #tpu.memory_space<vmem>>, vector<1x8x128xf32>,
    %c32 = arith.constant 32 : index
    %c0_33 = arith.constant 0 : index
    %98 = vector.load %arg5[%c32, %c0_33] : memref<64x512xf32, #tpu.memory_space<vmem>>, vector<8x512xf32>
    %cst_34 = arith.constant dense<0.000000e+00> : vector<8x512xf32>
    %99 = tpu.matmul %94, %7, %cst_34 {dimension_numbers = #tpu.dot_dimension_numbers<[1], [0], [0], [1], [0, 0, 1, 1], [], []>} : vector<8x128xf32>, vector<128x512xf32>, vector<8x512xf32> -> vector<8x512xf32>
    %100 = arith.addf %98, %99 : vector<8x512xf32>
    %101 = vector.extract_strided_slice %100 {offsets = [0, 0], sizes = [8, 384], strides = [1, 1]} : vector<8x512xf32> to vector<8x384xf32>
    %102 = arith.negf %101 : vector<8x384xf32>
    %103 = math.exp %102 : vector<8x384xf32>
    %cst_35 = arith.constant 1.000000e+00 : f32
    %104 = vector.broadcast %cst_35 : f32 to vector<8x384xf32>
    %105 = arith.addf %104, %103 : vector<8x384xf32>
    %106 = arith.divf %104, %105 : vector<8x384xf32>
    %107 = vector.extract_strided_slice %100 {offsets = [0, 384], sizes = [8, 128], strides = [1, 1]} : vector<8x512xf32> to vector<8x128xf32>
    %108 = math.tanh %107 : vector<8x128xf32>
    %109 = vector.extract_strided_slice %106 {offsets = [0, 128], sizes = [8, 128], strides = [1, 1]} : vector<8x384xf32> to vector<8x128xf32>
    %110 = arith.mulf %109, %91 : vector<8x128xf32>
    %111 = vector.extract_strided_slice %106 {offsets = [0, 0], sizes = [8, 128], strides = [1, 1]} : vector<8x384xf32> to vector<8x128xf32>
    %112 = arith.mulf %111, %108 : vector<8x128xf32>
    %113 = arith.addf %110, %112 : vector<8x128xf32>
    %114 = vector.extract_strided_slice %106 {offsets = [0, 256], sizes = [8, 128], strides = [1, 1]} : vector<8x384xf32> to vector<8x128xf32>
    %115 = math.tanh %113 : vector<8x128xf32>
    %116 = arith.mulf %114, %115 : vector<8x128xf32>
    %c4 = arith.constant 4 : index
    %c0_36 = arith.constant 0 : index
    %c0_37 = arith.constant 0 : index
    %117 = vector.load %arg6[%c4, %c0_36, %c0_37] : memref<8x8x128xf32, #tpu.memory_space<vmem>>, vector<1x8x128xf32>
    %118 = vector.shape_cast %117 : vector<1x8x128xf32> to vector<8x128xf32>
    %119 = vector.shape_cast %116 : vector<8x128xf32> to vector<1x8x128xf32>
    tpu.vector_store %arg6[%c4, %c0_36, %c0_37], %119 {strides = array<i32>} : memref<8x8x128xf32, #tpu.memory_space<vmem>>, vector<1x8x128xf32>,
    %c40 = arith.constant 40 : index
    %c0_38 = arith.constant 0 : index
    %120 = vector.load %arg5[%c40, %c0_38] : memref<64x512xf32, #tpu.memory_space<vmem>>, vector<8x512xf32>
    %cst_39 = arith.constant dense<0.000000e+00> : vector<8x512xf32>
    %121 = tpu.matmul %116, %7, %cst_39 {dimension_numbers = #tpu.dot_dimension_numbers<[1], [0], [0], [1], [0, 0, 1, 1], [], []>} : vector<8x128xf32>, vector<128x512xf32>, vector<8x512xf32> -> vector<8x512xf32>
    %122 = arith.addf %120, %121 : vector<8x512xf32>
    %123 = vector.extract_strided_slice %122 {offsets = [0, 0], sizes = [8, 384], strides = [1, 1]} : vector<8x512xf32> to vector<8x384xf32>
    %124 = arith.negf %123 : vector<8x384xf32>
    %125 = math.exp %124 : vector<8x384xf32>
    %cst_40 = arith.constant 1.000000e+00 : f32
    %126 = vector.broadcast %cst_40 : f32 to vector<8x384xf32>
    %127 = arith.addf %126, %125 : vector<8x384xf32>
    %128 = arith.divf %126, %127 : vector<8x384xf32>
    %129 = vector.extract_strided_slice %122 {offsets = [0, 384], sizes = [8, 128], strides = [1, 1]} : vector<8x512xf32> to vector<8x128xf32>
    %130 = math.tanh %129 : vector<8x128xf32>
    %131 = vector.extract_strided_slice %128 {offsets = [0, 128], sizes = [8, 128], strides = [1, 1]} : vector<8x384xf32> to vector<8x128xf32>
    %132 = arith.mulf %131, %113 : vector<8x128xf32>
    %133 = vector.extract_strided_slice %128 {offsets = [0, 0], sizes = [8, 128], strides = [1, 1]} : vector<8x384xf32> to vector<8x128xf32>
    %134 = arith.mulf %133, %130 : vector<8x128xf32>
    %135 = arith.addf %132, %134 : vector<8x128xf32>
    %136 = vector.extract_strided_slice %128 {offsets = [0, 256], sizes = [8, 128], strides = [1, 1]} : vector<8x384xf32> to vector<8x128xf32>
    %137 = math.tanh %135 : vector<8x128xf32>
    %138 = arith.mulf %136, %137 : vector<8x128xf32>
    %c5 = arith.constant 5 : index
    %c0_41 = arith.constant 0 : index
    %c0_42 = arith.constant 0 : index
    %139 = vector.load %arg6[%c5, %c0_41, %c0_42] : memref<8x8x128xf32, #tpu.memory_space<vmem>>, vector<1x8x128xf32>
    %140 = vector.shape_cast %139 : vector<1x8x128xf32> to vector<8x128xf32>
    %141 = vector.shape_cast %138 : vector<8x128xf32> to vector<1x8x128xf32>
    tpu.vector_store %arg6[%c5, %c0_41, %c0_42], %141 {strides = array<i32>} : memref<8x8x128xf32, #tpu.memory_space<vmem>>, vector<1x8x128xf32>,
    %c48 = arith.constant 48 : index
    %c0_43 = arith.constant 0 : index
    %142 = vector.load %arg5[%c48, %c0_43] : memref<64x512xf32, #tpu.memory_space<vmem>>, vector<8x512xf32>
    %cst_44 = arith.constant dense<0.000000e+00> : vector<8x512xf32>
    %143 = tpu.matmul %138, %7, %cst_44 {dimension_numbers = #tpu.dot_dimension_numbers<[1], [0], [0], [1], [0, 0, 1, 1], [], []>} : vector<8x128xf32>, vector<128x512xf32>, vector<8x512xf32> -> vector<8x512xf32>
    %144 = arith.addf %142, %143 : vector<8x512xf32>
    %145 = vector.extract_strided_slice %144 {offsets = [0, 0], sizes = [8, 384], strides = [1, 1]} : vector<8x512xf32> to vector<8x384xf32>
    %146 = arith.negf %145 : vector<8x384xf32>
    %147 = math.exp %146 : vector<8x384xf32>
    %cst_45 = arith.constant 1.000000e+00 : f32
    %148 = vector.broadcast %cst_45 : f32 to vector<8x384xf32>
    %149 = arith.addf %148, %147 : vector<8x384xf32>
    %150 = arith.divf %148, %149 : vector<8x384xf32>
    %151 = vector.extract_strided_slice %144 {offsets = [0, 384], sizes = [8, 128], strides = [1, 1]} : vector<8x512xf32> to vector<8x128xf32>
    %152 = math.tanh %151 : vector<8x128xf32>
    %153 = vector.extract_strided_slice %150 {offsets = [0, 128], sizes = [8, 128], strides = [1, 1]} : vector<8x384xf32> to vector<8x128xf32>
    %154 = arith.mulf %153, %135 : vector<8x128xf32>
    %155 = vector.extract_strided_slice %150 {offsets = [0, 0], sizes = [8, 128], strides = [1, 1]} : vector<8x384xf32> to vector<8x128xf32>
    %156 = arith.mulf %155, %152 : vector<8x128xf32>
    %157 = arith.addf %154, %156 : vector<8x128xf32>
    %158 = vector.extract_strided_slice %150 {offsets = [0, 256], sizes = [8, 128], strides = [1, 1]} : vector<8x384xf32> to vector<8x128xf32>
    %159 = math.tanh %157 : vector<8x128xf32>
    %160 = arith.mulf %158, %159 : vector<8x128xf32>
    %c6 = arith.constant 6 : index
    %c0_46 = arith.constant 0 : index
    %c0_47 = arith.constant 0 : index
    %161 = vector.load %arg6[%c6, %c0_46, %c0_47] : memref<8x8x128xf32, #tpu.memory_space<vmem>>, vector<1x8x128xf32>
    %162 = vector.shape_cast %161 : vector<1x8x128xf32> to vector<8x128xf32>
    %163 = vector.shape_cast %160 : vector<8x128xf32> to vector<1x8x128xf32>
    tpu.vector_store %arg6[%c6, %c0_46, %c0_47], %163 {strides = array<i32>} : memref<8x8x128xf32, #tpu.memory_space<vmem>>, vector<1x8x128xf32>,
    %c56 = arith.constant 56 : index
    %c0_48 = arith.constant 0 : index
    %164 = vector.load %arg5[%c56, %c0_48] : memref<64x512xf32, #tpu.memory_space<vmem>>, vector<8x512xf32>
    %cst_49 = arith.constant dense<0.000000e+00> : vector<8x512xf32>
    %165 = tpu.matmul %160, %7, %cst_49 {dimension_numbers = #tpu.dot_dimension_numbers<[1], [0], [0], [1], [0, 0, 1, 1], [], []>} : vector<8x128xf32>, vector<128x512xf32>, vector<8x512xf32> -> vector<8x512xf32>
    %166 = arith.addf %164, %165 : vector<8x512xf32>
    %167 = vector.extract_strided_slice %166 {offsets = [0, 0], sizes = [8, 384], strides = [1, 1]} : vector<8x512xf32> to vector<8x384xf32>
    %168 = arith.negf %167 : vector<8x384xf32>
    %169 = math.exp %168 : vector<8x384xf32>
    %cst_50 = arith.constant 1.000000e+00 : f32
    %170 = vector.broadcast %cst_50 : f32 to vector<8x384xf32>
    %171 = arith.addf %170, %169 : vector<8x384xf32>
    %172 = arith.divf %170, %171 : vector<8x384xf32>
    %173 = vector.extract_strided_slice %166 {offsets = [0, 384], sizes = [8, 128], strides = [1, 1]} : vector<8x512xf32> to vector<8x128xf32>
    %174 = math.tanh %173 : vector<8x128xf32>
    %175 = vector.extract_strided_slice %172 {offsets = [0, 128], sizes = [8, 128], strides = [1, 1]} : vector<8x384xf32> to vector<8x128xf32>
    %176 = arith.mulf %175, %157 : vector<8x128xf32>
    %177 = vector.extract_strided_slice %172 {offsets = [0, 0], sizes = [8, 128], strides = [1, 1]} : vector<8x384xf32> to vector<8x128xf32>
    %178 = arith.mulf %177, %174 : vector<8x128xf32>
    %179 = arith.addf %176, %178 : vector<8x128xf32>
    %180 = vector.extract_strided_slice %172 {offsets = [0, 256], sizes = [8, 128], strides = [1, 1]} : vector<8x384xf32> to vector<8x128xf32>
    %181 = math.tanh %179 : vector<8x128xf32>
    %182 = arith.mulf %180, %181 : vector<8x128xf32>
    %c7 = arith.constant 7 : index
    %c0_51 = arith.constant 0 : index
    %c0_52 = arith.constant 0 : index
    %183 = vector.load %arg6[%c7, %c0_51, %c0_52] : memref<8x8x128xf32, #tpu.memory_space<vmem>>, vector<1x8x128xf32>
    %184 = vector.shape_cast %183 : vector<1x8x128xf32> to vector<8x128xf32>
    %185 = vector.shape_cast %182 : vector<8x128xf32> to vector<1x8x128xf32>
    tpu.vector_store %arg6[%c7, %c0_51, %c0_52], %185 {strides = array<i32>} : memref<8x8x128xf32, #tpu.memory_space<vmem>>, vector<1x8x128xf32>,
    %186 = tpu.iota {dimensions = array<i32: 1>} : vector<8x128xi32>
    %c32_i32 = arith.constant 32 : i32
    %187 = vector.broadcast %c32_i32 : i32 to vector<8x128xi32>
    %188 = arith.cmpi slt, %186, %187 : vector<8x128xi32>
    %c0_53 = arith.constant 0 : index
    %c0_54 = arith.constant 0 : index
    %c0_55 = arith.constant 0 : index
    %189 = vector.load %arg6[%c0_53, %c0_54, %c0_55] : memref<8x8x128xf32, #tpu.memory_space<vmem>>, vector<1x8x128xf32>
    %190 = vector.shape_cast %189 : vector<1x8x128xf32> to vector<8x128xf32>
    %c7_56 = arith.constant 7 : index
    %c0_57 = arith.constant 0 : index
    %c0_58 = arith.constant 0 : index
    %191 = vector.load %arg6[%c7_56, %c0_57, %c0_58] : memref<8x8x128xf32, #tpu.memory_space<vmem>>, vector<1x8x128xf32>
    %192 = vector.shape_cast %191 : vector<1x8x128xf32> to vector<8x128xf32>
    %193 = arith.select %188, %190, %192 : vector<8x128xi1>, vector<8x128xf32>
    %c0_59 = arith.constant 0 : index
    %c0_60 = arith.constant 0 : index
    %c0_61 = arith.constant 0 : index
    %194 = vector.load %arg4[%c0_59, %c0_60, %c0_61] : memref<8x8x128xf32, #tpu.memory_space<vmem>>, vector<1x8x128xf32>
    %195 = vector.shape_cast %194 : vector<1x8x128xf32> to vector<8x128xf32>
    %196 = vector.shape_cast %193 : vector<8x128xf32> to vector<1x8x128xf32>
    tpu.vector_store %arg4[%c0_59, %c0_60, %c0_61], %196 {strides = array<i32>} : memref<8x8x128xf32, #tpu.memory_space<vmem>>, vector<1x8x128xf32>,
    %c1_62 = arith.constant 1 : index
    %c0_63 = arith.constant 0 : index
    %c0_64 = arith.constant 0 : index
    %197 = vector.load %arg6[%c1_62, %c0_63, %c0_64] : memref<8x8x128xf32, #tpu.memory_space<vmem>>, vector<1x8x128xf32>
    %198 = vector.shape_cast %197 : vector<1x8x128xf32> to vector<8x128xf32>
    %c6_65 = arith.constant 6 : index
    %c0_66 = arith.constant 0 : index
    %c0_67 = arith.constant 0 : index
    %199 = vector.load %arg6[%c6_65, %c0_66, %c0_67] : memref<8x8x128xf32, #tpu.memory_space<vmem>>, vector<1x8x128xf32>
    %200 = vector.shape_cast %199 : vector<1x8x128xf32> to vector<8x128xf32>
    %201 = arith.select %188, %198, %200 : vector<8x128xi1>, vector<8x128xf32>
    %c1_68 = arith.constant 1 : index
    %c0_69 = arith.constant 0 : index
    %c0_70 = arith.constant 0 : index
    %202 = vector.load %arg4[%c1_68, %c0_69, %c0_70] : memref<8x8x128xf32, #tpu.memory_space<vmem>>, vector<1x8x128xf32>
    %203 = vector.shape_cast %202 : vector<1x8x128xf32> to vector<8x128xf32>
    %204 = vector.shape_cast %201 : vector<8x128xf32> to vector<1x8x128xf32>
    tpu.vector_store %arg4[%c1_68, %c0_69, %c0_70], %204 {strides = array<i32>} : memref<8x8x128xf32, #tpu.memory_space<vmem>>, vector<1x8x128xf32>,
    %c2_71 = arith.constant 2 : index
    %c0_72 = arith.constant 0 : index
    %c0_73 = arith.constant 0 : index
    %205 = vector.load %arg6[%c2_71, %c0_72, %c0_73] : memref<8x8x128xf32, #tpu.memory_space<vmem>>, vector<1x8x128xf32>
    %206 = vector.shape_cast %205 : vector<1x8x128xf32> to vector<8x128xf32>
    %c5_74 = arith.constant 5 : index
    %c0_75 = arith.constant 0 : index
    %c0_76 = arith.constant 0 : index
    %207 = vector.load %arg6[%c5_74, %c0_75, %c0_76] : memref<8x8x128xf32, #tpu.memory_space<vmem>>, vector<1x8x128xf32>
    %208 = vector.shape_cast %207 : vector<1x8x128xf32> to vector<8x128xf32>
    %209 = arith.select %188, %206, %208 : vector<8x128xi1>, vector<8x128xf32>
    %c2_77 = arith.constant 2 : index
    %c0_78 = arith.constant 0 : index
    %c0_79 = arith.constant 0 : index
    %210 = vector.load %arg4[%c2_77, %c0_78, %c0_79] : memref<8x8x128xf32, #tpu.memory_space<vmem>>, vector<1x8x128xf32>
    %211 = vector.shape_cast %210 : vector<1x8x128xf32> to vector<8x128xf32>
    %212 = vector.shape_cast %209 : vector<8x128xf32> to vector<1x8x128xf32>
    tpu.vector_store %arg4[%c2_77, %c0_78, %c0_79], %212 {strides = array<i32>} : memref<8x8x128xf32, #tpu.memory_space<vmem>>, vector<1x8x128xf32>,
    %c3_80 = arith.constant 3 : index
    %c0_81 = arith.constant 0 : index
    %c0_82 = arith.constant 0 : index
    %213 = vector.load %arg6[%c3_80, %c0_81, %c0_82] : memref<8x8x128xf32, #tpu.memory_space<vmem>>, vector<1x8x128xf32>
    %214 = vector.shape_cast %213 : vector<1x8x128xf32> to vector<8x128xf32>
    %c4_83 = arith.constant 4 : index
    %c0_84 = arith.constant 0 : index
    %c0_85 = arith.constant 0 : index
    %215 = vector.load %arg6[%c4_83, %c0_84, %c0_85] : memref<8x8x128xf32, #tpu.memory_space<vmem>>, vector<1x8x128xf32>
    %216 = vector.shape_cast %215 : vector<1x8x128xf32> to vector<8x128xf32>
    %217 = arith.select %188, %214, %216 : vector<8x128xi1>, vector<8x128xf32>
    %c3_86 = arith.constant 3 : index
    %c0_87 = arith.constant 0 : index
    %c0_88 = arith.constant 0 : index
    %218 = vector.load %arg4[%c3_86, %c0_87, %c0_88] : memref<8x8x128xf32, #tpu.memory_space<vmem>>, vector<1x8x128xf32>
    %219 = vector.shape_cast %218 : vector<1x8x128xf32> to vector<8x128xf32>
    %220 = vector.shape_cast %217 : vector<8x128xf32> to vector<1x8x128xf32>
    tpu.vector_store %arg4[%c3_86, %c0_87, %c0_88], %220 {strides = array<i32>} : memref<8x8x128xf32, #tpu.memory_space<vmem>>, vector<1x8x128xf32>,
    %c4_89 = arith.constant 4 : index
    %c0_90 = arith.constant 0 : index
    %c0_91 = arith.constant 0 : index
    %221 = vector.load %arg6[%c4_89, %c0_90, %c0_91] : memref<8x8x128xf32, #tpu.memory_space<vmem>>, vector<1x8x128xf32>
    %222 = vector.shape_cast %221 : vector<1x8x128xf32> to vector<8x128xf32>
    %c3_92 = arith.constant 3 : index
    %c0_93 = arith.constant 0 : index
    %c0_94 = arith.constant 0 : index
    %223 = vector.load %arg6[%c3_92, %c0_93, %c0_94] : memref<8x8x128xf32, #tpu.memory_space<vmem>>, vector<1x8x128xf32>
    %224 = vector.shape_cast %223 : vector<1x8x128xf32> to vector<8x128xf32>
    %225 = arith.select %188, %222, %224 : vector<8x128xi1>, vector<8x128xf32>
    %c4_95 = arith.constant 4 : index
    %c0_96 = arith.constant 0 : index
    %c0_97 = arith.constant 0 : index
    %226 = vector.load %arg4[%c4_95, %c0_96, %c0_97] : memref<8x8x128xf32, #tpu.memory_space<vmem>>, vector<1x8x128xf32>
    %227 = vector.shape_cast %226 : vector<1x8x128xf32> to vector<8x128xf32>
    %228 = vector.shape_cast %225 : vector<8x128xf32> to vector<1x8x128xf32>
    tpu.vector_store %arg4[%c4_95, %c0_96, %c0_97], %228 {strides = array<i32>} : memref<8x8x128xf32, #tpu.memory_space<vmem>>, vector<1x8x128xf32>,
    %c5_98 = arith.constant 5 : index
    %c0_99 = arith.constant 0 : index
    %c0_100 = arith.constant 0 : index
    %229 = vector.load %arg6[%c5_98, %c0_99, %c0_100] : memref<8x8x128xf32, #tpu.memory_space<vmem>>, vector<1x8x128xf32>
    %230 = vector.shape_cast %229 : vector<1x8x128xf32> to vector<8x128xf32>
    %c2_101 = arith.constant 2 : index
    %c0_102 = arith.constant 0 : index
    %c0_103 = arith.constant 0 : index
    %231 = vector.load %arg6[%c2_101, %c0_102, %c0_103] : memref<8x8x128xf32, #tpu.memory_space<vmem>>, vector<1x8x128xf32>
    %232 = vector.shape_cast %231 : vector<1x8x128xf32> to vector<8x128xf32>
    %233 = arith.select %188, %230, %232 : vector<8x128xi1>, vector<8x128xf32>
    %c5_104 = arith.constant 5 : index
    %c0_105 = arith.constant 0 : index
    %c0_106 = arith.constant 0 : index
    %234 = vector.load %arg4[%c5_104, %c0_105, %c0_106] : memref<8x8x128xf32, #tpu.memory_space<vmem>>, vector<1x8x128xf32>
    %235 = vector.shape_cast %234 : vector<1x8x128xf32> to vector<8x128xf32>
    %236 = vector.shape_cast %233 : vector<8x128xf32> to vector<1x8x128xf32>
    tpu.vector_store %arg4[%c5_104, %c0_105, %c0_106], %236 {strides = array<i32>} : memref<8x8x128xf32, #tpu.memory_space<vmem>>, vector<1x8x128xf32>,
    %c6_107 = arith.constant 6 : index
    %c0_108 = arith.constant 0 : index
    %c0_109 = arith.constant 0 : index
    %237 = vector.load %arg6[%c6_107, %c0_108, %c0_109] : memref<8x8x128xf32, #tpu.memory_space<vmem>>, vector<1x8x128xf32>
    %238 = vector.shape_cast %237 : vector<1x8x128xf32> to vector<8x128xf32>
    %c1_110 = arith.constant 1 : index
    %c0_111 = arith.constant 0 : index
    %c0_112 = arith.constant 0 : index
    %239 = vector.load %arg6[%c1_110, %c0_111, %c0_112] : memref<8x8x128xf32, #tpu.memory_space<vmem>>, vector<1x8x128xf32>
    %240 = vector.shape_cast %239 : vector<1x8x128xf32> to vector<8x128xf32>
    %241 = arith.select %188, %238, %240 : vector<8x128xi1>, vector<8x128xf32>
    %c6_113 = arith.constant 6 : index
    %c0_114 = arith.constant 0 : index
    %c0_115 = arith.constant 0 : index
    %242 = vector.load %arg4[%c6_113, %c0_114, %c0_115] : memref<8x8x128xf32, #tpu.memory_space<vmem>>, vector<1x8x128xf32>
    %243 = vector.shape_cast %242 : vector<1x8x128xf32> to vector<8x128xf32>
    %244 = vector.shape_cast %241 : vector<8x128xf32> to vector<1x8x128xf32>
    tpu.vector_store %arg4[%c6_113, %c0_114, %c0_115], %244 {strides = array<i32>} : memref<8x8x128xf32, #tpu.memory_space<vmem>>, vector<1x8x128xf32>,
    %c7_116 = arith.constant 7 : index
    %c0_117 = arith.constant 0 : index
    %c0_118 = arith.constant 0 : index
    %245 = vector.load %arg6[%c7_116, %c0_117, %c0_118] : memref<8x8x128xf32, #tpu.memory_space<vmem>>, vector<1x8x128xf32>
    %246 = vector.shape_cast %245 : vector<1x8x128xf32> to vector<8x128xf32>
    %c0_119 = arith.constant 0 : index
    %c0_120 = arith.constant 0 : index
    %c0_121 = arith.constant 0 : index
    %247 = vector.load %arg6[%c0_119, %c0_120, %c0_121] : memref<8x8x128xf32, #tpu.memory_space<vmem>>, vector<1x8x128xf32>
    %248 = vector.shape_cast %247 : vector<1x8x128xf32> to vector<8x128xf32>
    %249 = arith.select %188, %246, %248 : vector<8x128xi1>, vector<8x128xf32>
    %c7_122 = arith.constant 7 : index
    %c0_123 = arith.constant 0 : index
    %c0_124 = arith.constant 0 : index
    %250 = vector.load %arg4[%c7_122, %c0_123, %c0_124] : memref<8x8x128xf32, #tpu.memory_space<vmem>>, vector<1x8x128xf32>
    %251 = vector.shape_cast %250 : vector<1x8x128xf32> to vector<8x128xf32>
    %252 = vector.shape_cast %249 : vector<8x128xf32> to vector<1x8x128xf32>
    tpu.vector_store %arg4[%c7_122, %c0_123, %c0_124], %252 {strides = array<i32>} : memref<8x8x128xf32, #tpu.memory_space<vmem>>, vector<1x8x128xf32>,
    return
  }
}

</mosaic_0001>

<bundles_post_ra>
// kernel: forward.1
= control target key start
LH: loop header
LB: loop body
LE: loop exit
PB: predicated region body
PF: predicated region fallthrough
CT: control target
= control target key end

     0   :  { %vm51_vm0 = vcmask 261120   ;;  %s3359_s1 = inlined_call_operand.vmem [shape: f32[32,512], index: 1, kind: input, shape index: {}]   ;;  %s3360_s0 = inlined_call_operand.vmem [shape: f32[64,32], index: 0, kind: input, shape index: {}]   ;;  %s3361_s2 = inlined_call_operand.vmem [shape: f32[128,512], index: 2, kind: input, shape index: {}]   ;;  %s3362_s3 = inlined_call_operand.vmem [shape: f32[1,512], index: 3, kind: input, shape index: {}]   ;;  %s3363_s4 = inlined_call_operand.vmem [shape: f32[8,8,128], index: 4, kind: output, shape index: {}]  }
   0x1   :  { %v37_v0 = vld [vmem:[%s3359_s1 + $0x60] sm:$0xff]  ;;  %v38_v1 = vld [vmem:[%s3359_s1 + $0x68] sm:$0xff]  ;;  %v39_v2 = vld [vmem:[%s3359_s1 + $0x70] sm:$0xff] }
   0x2   :  { %88 = vmatpush.msra.mxu0 %v37_v0  ;;  %129 = vmatpush.msra.mxu1 %v38_v1  ;;  %v40_v3 = vld [vmem:[%s3359_s1 + $0x78] sm:$0xff]  ;;  %v33_v4 = vld [vmem:[%s3359_s1 + $0x40] sm:$0xff]  ;;  %v34_v5 = vld [vmem:[%s3359_s1 + $0x48] sm:$0xff] }
   0x3   :  { %170 = vmatpush.msra.mxu2 %v39_v2  ;;  %211 = vmatpush.msra.mxu3 %v40_v3  ;;  %v35_v6 = vld [vmem:[%s3359_s1 + $0x50] sm:$0xff]  ;;  %v36_v7 = vld [vmem:[%s3359_s1 + $0x58] sm:$0xff]  ;;  %v29_v8 = vld [vmem:[%s3359_s1 + $0x20] sm:$0xff] }
   0x4   :  { %89 = vmatpush.msra.mxu0 %v33_v4  ;;  %130 = vmatpush.msra.mxu1 %v34_v5  ;;  %v30_v9 = vld [vmem:[%s3359_s1 + $0x28] sm:$0xff]  ;;  %v31_v10 = vld [vmem:[%s3359_s1 + $0x30] sm:$0xff]  ;;  %v32_v11 = vld [vmem:[%s3359_s1 + $0x38] sm:$0xff] }
   0x5   :  { %171 = vmatpush.msra.mxu2 %v35_v6  ;;  %212 = vmatpush.msra.mxu3 %v36_v7  ;;  %v25_v12 = vld [vmem:[%s3359_s1] sm:$0xff]  ;;  %v26_v13 = vld [vmem:[%s3359_s1 + $0x8] sm:$0xff]  ;;  %v27_v14 = vld [vmem:[%s3359_s1 + $0x10] sm:$0xff] }
   0x6   :  { %90 = vmatpush.msra.mxu0 %v29_v8  ;;  %131 = vmatpush.msra.mxu1 %v30_v9  ;;  %v28_v15 = vld [vmem:[%s3359_s1 + $0x18] sm:$0xff]  ;;  %v17_v16 = vld [vmem:[%s3360_s0] sm:$0xff]  ;;  %v1946_v18 = vld [vmem:[%s3361_s2 + $0x1e8] sm:$0xff] }
   0x7   :  { %172 = vmatpush.msra.mxu2 %v31_v10  ;;  %213 = vmatpush.msra.mxu3 %v32_v11  ;;  %v1941_v17 = vld [vmem:[%s3361_s2 + $0x1e0] sm:$0xff]  ;;  %v1953_v19 = vld [vmem:[%s3361_s2 + $0x1f0] sm:$0xff]  ;;  %v1958_v20 = vld [vmem:[%s3361_s2 + $0x1f8] sm:$0xff] }
   0x8   :  { %91 = vmatpush.msra.mxu0 %v25_v12  ;;  %132 = vmatpush.msra.mxu1 %v26_v13  ;;  %v1965_v21 = vld [vmem:[%s3361_s2 + $0x1c0] sm:$0xff]  ;;  %v1970_v22 = vld [vmem:[%s3361_s2 + $0x1c8] sm:$0xff]  ;;  %v1977_v23 = vld [vmem:[%s3361_s2 + $0x1d0] sm:$0xff] }
   0x9   :  { %173 = vmatpush.msra.mxu2 %v27_v14  ;;  %214 = vmatpush.msra.mxu3 %v28_v15  ;;  %v1982_v24 = vld [vmem:[%s3361_s2 + $0x1d8] sm:$0xff]  ;;  %v1988_v25 = vld [vmem:[%s3361_s2 + $0x1a0] sm:$0xff]  ;;  %v1993_v26 = vld [vmem:[%s3361_s2 + $0x1a8] sm:$0xff] }
   0xa   :  { %1605 = vmatmul.msk.f32.vlgmr.msra.gmra.mxu0 %vm51_vm0, %v17_v16  ;;  %1613 = vmatmul.msk.f32.vlgmr.msra.gmra.mxu1 %vm51_vm0, %v17_v16  ;;  %v2001_v27 = vld [vmem:[%s3361_s2 + $0x1b0] sm:$0xff]  ;;  %v2006_v28 = vld [vmem:[%s3361_s2 + $0x1b8] sm:$0xff]  ;;  %v18_v29 = vld [vmem:[%s3360_s0 + $0x8] sm:$0xff] }
   0xb   :  { %1621 = vmatmul.msk.f32.vlgmr.msra.gmra.mxu2 %vm51_vm0, %v17_v16  ;;  %1629 = vmatmul.msk.f32.vlgmr.msra.gmra.mxu3 %vm51_vm0, %v17_v16  ;;  %v2018_v30 = vld [vmem:[%s3361_s2 + $0x180] sm:$0xff]  ;;  %v2023_v31 = vld [vmem:[%s3361_s2 + $0x188] sm:$0xff]  ;;  %v2032_v32 = vld [vmem:[%s3361_s2 + $0x190] sm:$0xff] }
   0xc   :  { %340 = vmatpush.msrb.mxu0 %v1941_v17  ;;  %360 = vmatpush.msrb.mxu1 %v1946_v18  ;;  %v2037_v33 = vld [vmem:[%s3361_s2 + $0x198] sm:$0xff]  ;;  %v2044_v34 = vld [vmem:[%s3361_s2 + $0x160] sm:$0xff]  ;;  %v2049_v35 = vld [vmem:[%s3361_s2 + $0x168] sm:$0xff] }
   0xd   :  { %380 = vmatpush.msrb.mxu2 %v1953_v19  ;;  %400 = vmatpush.msrb.mxu3 %v1958_v20  ;;  %v2056_v36 = vld [vmem:[%s3361_s2 + $0x170] sm:$0xff]  ;;  %v2061_v37 = vld [vmem:[%s3361_s2 + $0x178] sm:$0xff]  ;;  %v2067_v38 = vld [vmem:[%s3361_s2 + $0x140] sm:$0xff] }
   0xe   :  { %341 = vmatpush.msrb.mxu0 %v1965_v21  ;;  %361 = vmatpush.msrb.mxu1 %v1970_v22  ;;  %v2072_v39 = vld [vmem:[%s3361_s2 + $0x148] sm:$0xff]  ;;  %v2080_v40 = vld [vmem:[%s3361_s2 + $0x150] sm:$0xff]  ;;  %v2085_v41 = vld [vmem:[%s3361_s2 + $0x158] sm:$0xff] }
   0xf   :  { %381 = vmatpush.msrb.mxu2 %v1977_v23  ;;  %401 = vmatpush.msrb.mxu3 %v1982_v24  ;;  %v19_v42 = vld [vmem:[%s3360_s0 + $0x10] sm:$0xff]  ;;  %v2097_v43 = vld [vmem:[%s3361_s2 + $0x120] sm:$0xff]  ;;  %v2102_v44 = vld [vmem:[%s3361_s2 + $0x128] sm:$0xff] }
  0x10   :  { %342 = vmatpush.msrb.mxu0 %v1988_v25  ;;  %362 = vmatpush.msrb.mxu1 %v1993_v26  ;;  %v2111_v45 = vld [vmem:[%s3361_s2 + $0x130] sm:$0xff]  ;;  %v2116_v46 = vld [vmem:[%s3361_s2 + $0x138] sm:$0xff]  ;;  %v2123_v47 = vld [vmem:[%s3361_s2 + $0x100] sm:$0xff] }
  0x11   :  { %382 = vmatpush.msrb.mxu2 %v2001_v27  ;;  %402 = vmatpush.msrb.mxu3 %v2006_v28  ;;  %v2128_v48 = vld [vmem:[%s3361_s2 + $0x108] sm:$0xff]  ;;  %v2135_v49 = vld [vmem:[%s3361_s2 + $0x110] sm:$0xff]  ;;  %v2140_v50 = vld [vmem:[%s3361_s2 + $0x118] sm:$0xff] }
  0x12   :  { %1606 = vmatmul.msk.f32.gmra.mxu0 %vm51_vm0, %v18_v29  ;;  %1614 = vmatmul.msk.f32.gmra.mxu1 %vm51_vm0, %v18_v29  ;;  %v2146_v51 = vld [vmem:[%s3361_s2 + $0xe0] sm:$0xff]  ;;  %v2151_v52 = vld [vmem:[%s3361_s2 + $0xe8] sm:$0xff]  ;;  %v2159_v53 = vld [vmem:[%s3361_s2 + $0xf0] sm:$0xff] }
  0x13   :  { %1622 = vmatmul.msk.f32.gmra.mxu2 %vm51_vm0, %v18_v29  ;;  %1630 = vmatmul.msk.f32.gmra.mxu3 %vm51_vm0, %v18_v29  ;;  %v2164_v54 = vld [vmem:[%s3361_s2 + $0xf8] sm:$0xff]  ;;  %v2176_v56 = vld [vmem:[%s3361_s2 + $0xc0] sm:$0xff]  ;;  %v2181_v57 = vld [vmem:[%s3361_s2 + $0xc8] sm:$0xff] }
  0x14   :  { %343 = vmatpush.msrb.mxu0 %v2018_v30  ;;  %363 = vmatpush.msrb.mxu1 %v2023_v31  ;;  %v20_v55 = vld [vmem:[%s3360_s0 + $0x18] sm:$0xff]  ;;  %v2190_v58 = vld [vmem:[%s3361_s2 + $0xd0] sm:$0xff]  ;;  %v2202_v60 = vld [vmem:[%s3361_s2 + $0xa0] sm:$0xff] }
  0x15   :  { %383 = vmatpush.msrb.mxu2 %v2032_v32  ;;  %403 = vmatpush.msrb.mxu3 %v2037_v33  ;;  %3459 = vst [vmem:[#allocation4_spill] sm:$0xff] %v2190_v58  ;;  %v2195_v59 = vld [vmem:[%s3361_s2 + $0xd8] sm:$0xff]  ;;  %v2207_v61 = vld [vmem:[%s3361_s2 + $0xa8] sm:$0xff]  ;;  %v2214_v62 = vld [vmem:[%s3361_s2 + $0xb0] sm:$0xff] }
  0x16   :  { %344 = vmatpush.msrb.mxu0 %v2044_v34  ;;  %364 = vmatpush.msrb.mxu1 %v2049_v35  ;;  %3460 = vst [vmem:[#allocation5_spill] sm:$0xff] %v2195_v59  ;;  %v2219_v63 = vld [vmem:[%s3361_s2 + $0xb8] sm:$0xff]  ;;  %v2225_v0 = vld [vmem:[%s3361_s2 + $0x80] sm:$0xff]  ;;  %v2230_v1 = vld [vmem:[%s3361_s2 + $0x88] sm:$0xff] }
  0x17   :  { %384 = vmatpush.msrb.mxu2 %v2056_v36  ;;  %404 = vmatpush.msrb.mxu3 %v2061_v37  ;;  %3461 = vst [vmem:[#allocation6_spill] sm:$0xff] %v2202_v60  ;;  %v2238_v2 = vld [vmem:[%s3361_s2 + $0x90] sm:$0xff]  ;;  %v2243_v3 = vld [vmem:[%s3361_s2 + $0x98] sm:$0xff]  ;;  %v21_v4 = vld [vmem:[%s3360_s0 + $0x20] sm:$0xff] }
  0x18   :  { %345 = vmatpush.msrb.mxu0 %v2067_v38  ;;  %365 = vmatpush.msrb.mxu1 %v2072_v39  ;;  %3462 = vst [vmem:[#allocation7_spill] sm:$0xff] %v2207_v61  ;;  %v2255_v5 = vld [vmem:[%s3361_s2 + $0x60] sm:$0xff]  ;;  %v2260_v6 = vld [vmem:[%s3361_s2 + $0x68] sm:$0xff]  ;;  %v2269_v7 = vld [vmem:[%s3361_s2 + $0x70] sm:$0xff] }
  0x19   :  { %385 = vmatpush.msrb.mxu2 %v2080_v40  ;;  %405 = vmatpush.msrb.mxu3 %v2085_v41  ;;  %3463 = vst [vmem:[#allocation8_spill] sm:$0xff] %v2214_v62  ;;  %v2274_v8 = vld [vmem:[%s3361_s2 + $0x78] sm:$0xff]  ;;  %v2281_v9 = vld [vmem:[%s3361_s2 + $0x40] sm:$0xff]  ;;  %v2286_v10 = vld [vmem:[%s3361_s2 + $0x48] sm:$0xff] }
  0x1a   :  { %1607 = vmatmul.msk.f32.gmra.mxu0 %vm51_vm0, %v19_v42  ;;  %1615 = vmatmul.msk.f32.gmra.mxu1 %vm51_vm0, %v19_v42  ;;  %3464 = vst [vmem:[#allocation9_spill] sm:$0xff] %v2219_v63  ;;  %v2293_v11 = vld [vmem:[%s3361_s2 + $0x50] sm:$0xff]  ;;  %v2298_v12 = vld [vmem:[%s3361_s2 + $0x58] sm:$0xff]  ;;  %v2304_v13 = vld [vmem:[%s3361_s2 + $0x20] sm:$0xff] }
  0x1b   :  { %1623 = vmatmul.msk.f32.gmra.mxu2 %vm51_vm0, %v19_v42  ;;  %1631 = vmatmul.msk.f32.gmra.mxu3 %vm51_vm0, %v19_v42  ;;  %3465 = vst [vmem:[#allocation10_spill] sm:$0xff] %v2225_v0  ;;  %v2309_v14 = vld [vmem:[%s3361_s2 + $0x28] sm:$0xff]  ;;  %v2317_v15 = vld [vmem:[%s3361_s2 + $0x30] sm:$0xff]  ;;  %v2322_v16 = vld [vmem:[%s3361_s2 + $0x38] sm:$0xff] }
  0x1c   :  { %346 = vmatpush.msrb.mxu0 %v2097_v43  ;;  %366 = vmatpush.msrb.mxu1 %v2102_v44  ;;  %3466 = vst [vmem:[#allocation11_spill] sm:$0xff] %v2230_v1  ;;  %v22_v29 = vld [vmem:[%s3360_s0 + $0x28] sm:$0xff]  ;;  %v2334_v42 = vld [vmem:[%s3361_s2] sm:$0xff] }
  0x1d   :  { %386 = vmatpush.msrb.mxu2 %v2111_v45  ;;  %406 = vmatpush.msrb.mxu3 %v2116_v46  ;;  %3467 = vst [vmem:[#allocation12_spill] sm:$0xff] %v2238_v2 }
  0x1e   :  { %347 = vmatpush.msrb.mxu0 %v2123_v47  ;;  %367 = vmatpush.msrb.mxu1 %v2128_v48  ;;  %3468 = vst [vmem:[#allocation13_spill] sm:$0xff] %v2243_v3 }
  0x1f   :  { %387 = vmatpush.msrb.mxu2 %v2135_v49  ;;  %407 = vmatpush.msrb.mxu3 %v2140_v50  ;;  %3469 = vst [vmem:[#allocation14_spill] sm:$0xff] %v2255_v5 }
  0x20   :  { %348 = vmatpush.msrb.mxu0 %v2146_v51  ;;  %368 = vmatpush.msrb.mxu1 %v2151_v52  ;;  %3470 = vst [vmem:[#allocation15_spill] sm:$0xff] %v2260_v6 }
  0x21   :  { %388 = vmatpush.msrb.mxu2 %v2159_v53  ;;  %408 = vmatpush.msrb.mxu3 %v2164_v54  ;;  %3471 = vst [vmem:[#allocation16_spill] sm:$0xff] %v2269_v7 }
  0x22   :  { %1608 = vmatmul.msk.f32.gmra.mxu0 %vm51_vm0, %v20_v55  ;;  %1616 = vmatmul.msk.f32.gmra.mxu1 %vm51_vm0, %v20_v55  ;;  %3472 = vst [vmem:[#allocation17_spill] sm:$0xff] %v2274_v8 }
  0x23   :  { %1624 = vmatmul.msk.f32.gmra.mxu2 %vm51_vm0, %v20_v55  ;;  %1632 = vmatmul.msk.f32.gmra.mxu3 %vm51_vm0, %v20_v55  ;;  %3473 = vst [vmem:[#allocation18_spill] sm:$0xff] %v2281_v9  ;;  %v2339_v55 = vld [vmem:[%s3361_s2 + $0x8] sm:$0xff] }
  0x24   :  { %349 = vmatpush.msrb.mxu0 %v2176_v56  ;;  %369 = vmatpush.msrb.mxu1 %v2181_v57  ;;  %3474 = vst [vmem:[#allocation19_spill] sm:$0xff] %v2286_v10 }
  0x25   :  { %389 = vmatpush.msrb.mxu2 %v2190_v58  ;;  %409 = vmatpush.msrb.mxu3 %v2195_v59  ;;  %3475 = vst [vmem:[#allocation20_spill] sm:$0xff] %v2293_v11 }
  0x26   :  { %350 = vmatpush.msrb.mxu0 %v2202_v60  ;;  %370 = vmatpush.msrb.mxu1 %v2207_v61  ;;  %3476 = vst [vmem:[#allocation21_spill] sm:$0xff] %v2298_v12 }
  0x27   :  { %390 = vmatpush.msrb.mxu2 %v2214_v62  ;;  %410 = vmatpush.msrb.mxu3 %v2219_v63  ;;  %3477 = vst [vmem:[#allocation22_spill] sm:$0xff] %v2304_v13 }
  0x28   :  { %351 = vmatpush.msrb.mxu0 %v2225_v0  ;;  %371 = vmatpush.msrb.mxu1 %v2230_v1  ;;  %3478 = vst [vmem:[#allocation23_spill] sm:$0xff] %v2309_v14 }
  0x29   :  { %391 = vmatpush.msrb.mxu2 %v2238_v2  ;;  %411 = vmatpush.msrb.mxu3 %v2243_v3  ;;  %3479 = vst [vmem:[#allocation24_spill] sm:$0xff] %v2317_v15 }
  0x2a   :  { %1609 = vmatmul.msk.f32.gmra.mxu0 %vm51_vm0, %v21_v4  ;;  %1617 = vmatmul.msk.f32.gmra.mxu1 %vm51_vm0, %v21_v4  ;;  %3480 = vst [vmem:[#allocation25_spill] sm:$0xff] %v2322_v16 }
  0x2b   :  { %1625 = vmatmul.msk.f32.gmra.mxu2 %vm51_vm0, %v21_v4  ;;  %1633 = vmatmul.msk.f32.gmra.mxu3 %vm51_vm0, %v21_v4  ;;  %3481 = vst [vmem:[#allocation26_spill] sm:$0xff] %v2334_v42  ;;  %v2348_v4 = vld [vmem:[%s3361_s2 + $0x10] sm:$0xff] }
  0x2c   :  { %352 = vmatpush.msrb.mxu0 %v2255_v5  ;;  %372 = vmatpush.msrb.mxu1 %v2260_v6  ;;  %3482 = vst [vmem:[#allocation27_spill] sm:$0xff] %v2339_v55 }
  0x2d   :  { %392 = vmatpush.msrb.mxu2 %v2269_v7  ;;  %412 = vmatpush.msrb.mxu3 %v2274_v8  ;;  %3483 = vst [vmem:[#allocation28_spill] sm:$0xff] %v2348_v4 }
  0x2e   :  { %353 = vmatpush.msrb.mxu0 %v2281_v9  ;;  %373 = vmatpush.msrb.mxu1 %v2286_v10 }
  0x2f   :  { %393 = vmatpush.msrb.mxu2 %v2293_v11  ;;  %413 = vmatpush.msrb.mxu3 %v2298_v12 }
  0x30   :  { %354 = vmatpush.msrb.mxu0 %v2304_v13  ;;  %374 = vmatpush.msrb.mxu1 %v2309_v14  ;;  %v2353_v14 = vld [vmem:[%s3361_s2 + $0x18] sm:$0xff] }
  0x31   :  { %394 = vmatpush.msrb.mxu2 %v2317_v15  ;;  %414 = vmatpush.msrb.mxu3 %v2322_v16  ;;  %3484 = vst [vmem:[#allocation29_spill] sm:$0xff] %v2353_v14  ;;  %v23_v16 = vld [vmem:[%s3360_s0 + $0x30] sm:$0xff] }
  0x32   :  { %1610 = vmatmul.msk.f32.gmra.mxu0 %vm51_vm0, %v22_v29  ;;  %1618 = vmatmul.msk.f32.gmra.mxu1 %vm51_vm0, %v22_v29 }
  0x33   :  { %1626 = vmatmul.msk.f32.gmra.mxu2 %vm51_vm0, %v22_v29  ;;  %1634 = vmatmul.msk.f32.gmra.mxu3 %vm51_vm0, %v22_v29  ;;  %v24_v29 = vld [vmem:[%s3360_s0 + $0x38] sm:$0xff] }
  0x34   :  { %355 = vmatpush.msrb.mxu0 %v2334_v42  ;;  %375 = vmatpush.msrb.mxu1 %v2339_v55 }
  0x35   :  { %395 = vmatpush.msrb.mxu2 %v2348_v4  ;;  %415 = vmatpush.msrb.mxu3 %v2353_v14 }
  0x36   :  { %492 = vmatpush.msra.mxu0 %v1941_v17  ;;  %512 = vmatpush.msra.mxu1 %v1946_v18 }
  0x37   :  { %532 = vmatpush.msra.mxu2 %v1953_v19  ;;  %552 = vmatpush.msra.mxu3 %v1958_v20 }
  0x38   :  { %493 = vmatpush.msra.mxu0 %v1965_v21  ;;  %513 = vmatpush.msra.mxu1 %v1970_v22 }
  0x39   :  { %533 = vmatpush.msra.mxu2 %v1977_v23  ;;  %553 = vmatpush.msra.mxu3 %v1982_v24 }
  0x3a   :  { %1611 = vmatmul.msk.f32.gmra.mxu0 %vm51_vm0, %v23_v16  ;;  %1619 = vmatmul.msk.f32.gmra.mxu1 %vm51_vm0, %v23_v16 }
  0x3b   :  { %1627 = vmatmul.msk.f32.gmra.mxu2 %vm51_vm0, %v23_v16  ;;  %1635 = vmatmul.msk.f32.gmra.mxu3 %vm51_vm0, %v23_v16  ;;  %v1861_v16 = vmov 0.0  }
  0x3c   :  { %494 = vmatpush.msra.mxu0 %v1988_v25  ;;  %514 = vmatpush.msra.mxu1 %v1993_v26 }
  0x3d   :  { %534 = vmatpush.msra.mxu2 %v2001_v27  ;;  %554 = vmatpush.msra.mxu3 %v2006_v28 }
  0x3e   :  { %495 = vmatpush.msra.mxu0 %v2018_v30  ;;  %515 = vmatpush.msra.mxu1 %v2023_v31 }
  0x3f   :  { %535 = vmatpush.msra.mxu2 %v2032_v32  ;;  %555 = vmatpush.msra.mxu3 %v2037_v33 }
  0x40   :  { %496 = vmatpush.msra.mxu0 %v2044_v34  ;;  %516 = vmatpush.msra.mxu1 %v2049_v35 }
  0x41   :  { %536 = vmatpush.msra.mxu2 %v2056_v36  ;;  %556 = vmatpush.msra.mxu3 %v2061_v37 }
  0x42   :  { %1612 = vmatmul.msk.f32.gmra.mxu0 %vm51_vm0, %v24_v29  ;;  %1620 = vmatmul.msk.f32.gmra.mxu1 %vm51_vm0, %v24_v29 }
  0x43   :  { %1628 = vmatmul.msk.f32.gmra.mxu2 %vm51_vm0, %v24_v29  ;;  %1636 = vmatmul.msk.f32.gmra.mxu3 %vm51_vm0, %v24_v29  ;;  %v3485_v29 = vld [vmem:[#allocation23_spill] sm:$0xff] }
  0x44   :  { %497 = vmatpush.msra.mxu0 %v2067_v38  ;;  %517 = vmatpush.msra.mxu1 %v2072_v39 }
  0x45   :  { %537 = vmatpush.msra.mxu2 %v2080_v40  ;;  %557 = vmatpush.msra.mxu3 %v2085_v41 }
  0x46   :  { %498 = vmatpush.msra.mxu0 %v2097_v43  ;;  %518 = vmatpush.msra.mxu1 %v2102_v44 }
  0x47   :  { %538 = vmatpush.msra.mxu2 %v2111_v45  ;;  %558 = vmatpush.msra.mxu3 %v2116_v46 }
  0x48   :  { %499 = vmatpush.msra.mxu0 %v2123_v47  ;;  %519 = vmatpush.msra.mxu1 %v2128_v48 }
  0x49   :  { %539 = vmatpush.msra.mxu2 %v2135_v49  ;;  %559 = vmatpush.msra.mxu3 %v2140_v50 }
  0x4a   :  { %356 = vmatmul.f32.vlgmr.msrb.gmra.mxu0 %v1861_v16  ;;  %376 = vmatmul.f32.vlgmr.msrb.gmra.mxu1 %v1861_v16 }
  0x4b   :  { %396 = vmatmul.f32.vlgmr.msrb.gmra.mxu2 %v1861_v16  ;;  %416 = vmatmul.f32.vlgmr.msrb.gmra.mxu3 %v1861_v16  ;;  %v3486_v16 = vld [vmem:[#allocation25_spill] sm:$0xff] }
  0x4c   :  { %500 = vmatpush.msra.mxu0 %v2146_v51  ;;  %520 = vmatpush.msra.mxu1 %v2151_v52 }
  0x4d   :  { %540 = vmatpush.msra.mxu2 %v2159_v53  ;;  %560 = vmatpush.msra.mxu3 %v2164_v54 }
  0x4e   :  { %501 = vmatpush.msra.mxu0 %v2176_v56  ;;  %521 = vmatpush.msra.mxu1 %v2181_v57 }
  0x4f   :  { %541 = vmatpush.msra.mxu2 %v2190_v58  ;;  %561 = vmatpush.msra.mxu3 %v2195_v59 }
  0x50   :  { %502 = vmatpush.msra.mxu0 %v2202_v60  ;;  %522 = vmatpush.msra.mxu1 %v2207_v61 }
  0x51   :  { %542 = vmatpush.msra.mxu2 %v2214_v62  ;;  %562 = vmatpush.msra.mxu3 %v2219_v63 }
  0x52   :  { %503 = vmatpush.msra.mxu0 %v2225_v0  ;;  %523 = vmatpush.msra.mxu1 %v2230_v1 }
  0x53   :  { %543 = vmatpush.msra.mxu2 %v2238_v2  ;;  %563 = vmatpush.msra.mxu3 %v2243_v3 }
  0x54   :  { %504 = vmatpush.msra.mxu0 %v2255_v5  ;;  %524 = vmatpush.msra.mxu1 %v2260_v6 }
  0x55   :  { %544 = vmatpush.msra.mxu2 %v2269_v7  ;;  %564 = vmatpush.msra.mxu3 %v2274_v8 }
  0x56   :  { %505 = vmatpush.msra.mxu0 %v2281_v9  ;;  %525 = vmatpush.msra.mxu1 %v2286_v10 }
  0x57   :  { %545 = vmatpush.msra.mxu2 %v2293_v11  ;;  %565 = vmatpush.msra.mxu3 %v2298_v12 }
  0x58   :  { %506 = vmatpush.msra.mxu0 %v2304_v13  ;;  %526 = vmatpush.msra.mxu1 %v3485_v29 }
  0x59   :  { %546 = vmatpush.msra.mxu2 %v2317_v15  ;;  %566 = vmatpush.msra.mxu3 %v3486_v16 }
  0x5a   :  { %507 = vmatpush.msra.mxu0 %v2334_v42  ;;  %527 = vmatpush.msra.mxu1 %v2339_v55 }
  0x5b   :  { %547 = vmatpush.msra.mxu2 %v2348_v4  ;;  %567 = vmatpush.msra.mxu3 %v2353_v14 }
  0x5c   :  { %645 = vmatpush.msrb.mxu0 %v1941_v17  ;;  %665 = vmatpush.msrb.mxu1 %v1946_v18 }
  0x5d   :  { %685 = vmatpush.msrb.mxu2 %v1953_v19  ;;  %705 = vmatpush.msrb.mxu3 %v1958_v20 }
  0x5e   :  { %646 = vmatpush.msrb.mxu0 %v1965_v21  ;;  %666 = vmatpush.msrb.mxu1 %v1970_v22 }
  0x5f   :  { %686 = vmatpush.msrb.mxu2 %v1977_v23  ;;  %706 = vmatpush.msrb.mxu3 %v1982_v24 }
  0x60   :  { %647 = vmatpush.msrb.mxu0 %v1988_v25  ;;  %667 = vmatpush.msrb.mxu1 %v1993_v26 }
  0x61   :  { %687 = vmatpush.msrb.mxu2 %v2001_v27  ;;  %707 = vmatpush.msrb.mxu3 %v2006_v28 }
  0x62   :  { %648 = vmatpush.msrb.mxu0 %v2018_v30  ;;  %668 = vmatpush.msrb.mxu1 %v2023_v31 }
  0x63   :  { %688 = vmatpush.msrb.mxu2 %v2032_v32  ;;  %708 = vmatpush.msrb.mxu3 %v2037_v33 }
  0x64   :  { %649 = vmatpush.msrb.mxu0 %v2044_v34  ;;  %669 = vmatpush.msrb.mxu1 %v2049_v35 }
  0x65   :  { %689 = vmatpush.msrb.mxu2 %v2056_v36  ;;  %709 = vmatpush.msrb.mxu3 %v2061_v37 }
  0x66   :  { %650 = vmatpush.msrb.mxu0 %v2067_v38  ;;  %670 = vmatpush.msrb.mxu1 %v2072_v39 }
  0x67   :  { %690 = vmatpush.msrb.mxu2 %v2080_v40  ;;  %710 = vmatpush.msrb.mxu3 %v2085_v41 }
  0x68   :  { %651 = vmatpush.msrb.mxu0 %v2097_v43  ;;  %671 = vmatpush.msrb.mxu1 %v2102_v44 }
  0x69   :  { %691 = vmatpush.msrb.mxu2 %v2111_v45  ;;  %711 = vmatpush.msrb.mxu3 %v2116_v46 }
  0x6a   :  { %652 = vmatpush.msrb.mxu0 %v2123_v47  ;;  %672 = vmatpush.msrb.mxu1 %v2128_v48 }
  0x6b   :  { %692 = vmatpush.msrb.mxu2 %v2135_v49  ;;  %712 = vmatpush.msrb.mxu3 %v2140_v50 }
  0x6c   :  { %653 = vmatpush.msrb.mxu0 %v2146_v51  ;;  %673 = vmatpush.msrb.mxu1 %v2151_v52 }
  0x6d   :  { %693 = vmatpush.msrb.mxu2 %v2159_v53  ;;  %713 = vmatpush.msrb.mxu3 %v2164_v54 }
  0x6e   :  { %654 = vmatpush.msrb.mxu0 %v2176_v56  ;;  %674 = vmatpush.msrb.mxu1 %v2181_v57 }
  0x6f   :  { %694 = vmatpush.msrb.mxu2 %v2190_v58  ;;  %714 = vmatpush.msrb.mxu3 %v2195_v59 }
  0x70   :  { %655 = vmatpush.msrb.mxu0 %v2202_v60  ;;  %675 = vmatpush.msrb.mxu1 %v2207_v61 }
  0x71   :  { %695 = vmatpush.msrb.mxu2 %v2214_v62  ;;  %715 = vmatpush.msrb.mxu3 %v2219_v63 }
  0x72   :  { %656 = vmatpush.msrb.mxu0 %v2225_v0  ;;  %676 = vmatpush.msrb.mxu1 %v2230_v1 }
  0x73   :  { %696 = vmatpush.msrb.mxu2 %v2238_v2  ;;  %716 = vmatpush.msrb.mxu3 %v2243_v3 }
  0x74   :  { %657 = vmatpush.msrb.mxu0 %v2255_v5  ;;  %677 = vmatpush.msrb.mxu1 %v2260_v6 }
  0x75   :  { %697 = vmatpush.msrb.mxu2 %v2269_v7  ;;  %717 = vmatpush.msrb.mxu3 %v2274_v8 }
  0x76   :  { %658 = vmatpush.msrb.mxu0 %v2281_v9  ;;  %678 = vmatpush.msrb.mxu1 %v2286_v10 }
  0x77   :  { %698 = vmatpush.msrb.mxu2 %v2293_v11  ;;  %718 = vmatpush.msrb.mxu3 %v2298_v12 }
  0x78   :  { %659 = vmatpush.msrb.mxu0 %v2304_v13  ;;  %679 = vmatpush.msrb.mxu1 %v3485_v29  ;;  %v41_v13 = vld [vmem:[%s3362_s3] sm:$0xf] }
  0x79   :  { %699 = vmatpush.msrb.mxu2 %v2317_v15  ;;  %719 = vmatpush.msrb.mxu3 %v3486_v16  ;;  %v43_v12 = vperm.slane %v41_v13, 0  ;;  %v44_v29 = vperm.slane %v41_v13, 1 }
  0x7a   :  { %660 = vmatpush.msrb.mxu0 %v2334_v42  ;;  %680 = vmatpush.msrb.mxu1 %v2339_v55 }
  0x7b   :  { %700 = vmatpush.msrb.mxu2 %v2348_v4  ;;  %720 = vmatpush.msrb.mxu3 %v2353_v14  ;;  %v2514_v4 = vperm.slane %v41_v13, 2  ;;  %v2516_v14 = vperm.slane %v41_v13, 3 }
  0x87   :  { %v93_v10 = vpop.f32.mrf.mxu0  ;;  %v134_v11 = vpop.f32.mrf.mxu1 }
  0x8e   :  { %v2506_v9 = vpop.f32.mrf.mxu2  ;;  %v2508_v15 = vpop.f32.mrf.mxu3 }
  0x8f   :  { %v96_v16 = vpop.f32.mrf.mxu0  ;;  %v137_v42 = vpop.f32.mrf.mxu1 }
  0x90   :  { %v2510_v8 = vadd.f32 %v96_v16, %v43_v12  ;;  %v2512_v55 = vadd.f32 %v137_v42, %v44_v29 }
  0x92   :  { %3487 = vst [vmem:[#allocation30_spill] sm:$0xff] %v2510_v8 }
  0x93   :  { %3488 = vst [vmem:[#allocation31_spill] sm:$0xff] %v2512_v55 }
  0x96   :  { %v178_v7 = vpop.f32.mrf.mxu2  ;;  %v219_v6 = vpop.f32.mrf.mxu3 }
  0x97   :  { %v2519_v5 = vadd.f32 %v178_v7, %v2514_v4  ;;  %v2522_v3 = vadd.f32 %v219_v6, %v2516_v14  ;;  %v99_v2 = vpop.f32.mrf.mxu0  ;;  %v140_v1 = vpop.f32.mrf.mxu1 }
  0x98   :  { %v2524_v0 = vadd.f32 %v99_v2, %v43_v12  ;;  %v2526_v16 = vadd.f32 %v140_v1, %v44_v29 }
  0x99   :  { %3489 = vst [vmem:[#allocation32_spill] sm:$0xff] %v2519_v5 }
  0x9a   :  { %3490 = vst [vmem:[#allocation33_spill] sm:$0xff] %v2522_v3 }
  0x9b   :  { %3491 = vst [vmem:[#allocation34_spill] sm:$0xff] %v2524_v0 }
  0x9c   :  { %3492 = vst [vmem:[#allocation35_spill] sm:$0xff] %v2526_v16 }
  0x9e   :  { %v181_v42 = vpop.f32.mrf.mxu2  ;;  %v222_v55 = vpop.f32.mrf.mxu3 }
  0x9f   :  { %v2529_v8 = vadd.f32 %v181_v42, %v2514_v4  ;;  %v2532_v13 = vadd.f32 %v222_v55, %v2516_v14  ;;  %v102_v63 = vpop.f32.mrf.mxu0  ;;  %v143_v7 = vpop.f32.mrf.mxu1 }
  0xa0   :  { %v2534_v5 = vadd.f32 %v102_v63, %v43_v12  ;;  %v2536_v6 = vadd.f32 %v143_v7, %v44_v29 }
  0xa1   :  { %3493 = vst [vmem:[#allocation36_spill] sm:$0xff] %v2529_v8 }
  0xa2   :  { %3494 = vst [vmem:[#allocation37_spill] sm:$0xff] %v2532_v13 }
  0xa3   :  { %3495 = vst [vmem:[#allocation38_spill] sm:$0xff] %v2534_v5 }
  0xa4   :  { %3496 = vst [vmem:[#allocation39_spill] sm:$0xff] %v2536_v6 }
  0xa6   :  { %v184_v3 = vpop.f32.mrf.mxu2  ;;  %v225_v62 = vpop.f32.mrf.mxu3 }
  0xa7   :  { %v2539_v2 = vadd.f32 %v184_v3, %v2514_v4  ;;  %v2542_v1 = vadd.f32 %v225_v62, %v2516_v14  ;;  %v105_v16 = vpop.f32.mrf.mxu0  ;;  %v146_v42 = vpop.f32.mrf.mxu1 }
  0xa8   :  { %v2544_v8 = vadd.f32 %v105_v16, %v43_v12  ;;  %v2546_v55 = vadd.f32 %v146_v42, %v44_v29 }
  0xa9   :  { %3497 = vst [vmem:[#allocation40_spill] sm:$0xff] %v2539_v2 }
  0xaa   :  { %3498 = vst [vmem:[#allocation41_spill] sm:$0xff] %v2542_v1 }
  0xab   :  { %3499 = vst [vmem:[#allocation42_spill] sm:$0xff] %v2544_v8 }
  0xac   :  { %3500 = vst [vmem:[#allocation43_spill] sm:$0xff] %v2546_v55 }
  0xae   :  { %v187_v13 = vpop.f32.mrf.mxu2  ;;  %v228_v0 = vpop.f32.mrf.mxu3 }
  0xaf   :  { %v2549_v63 = vadd.f32 %v187_v13, %v2514_v4  ;;  %v2552_v7 = vadd.f32 %v228_v0, %v2516_v14  ;;  %v108_v6 = vpop.f32.mrf.mxu0  ;;  %v149_v3 = vpop.f32.mrf.mxu1 }
  0xb0   :  { %v2554_v2 = vadd.f32 %v108_v6, %v43_v12  ;;  %v2556_v62 = vadd.f32 %v149_v3, %v44_v29 }
  0xb1   :  { %3501 = vst [vmem:[#allocation44_spill] sm:$0xff] %v2549_v63 }
  0xb2   :  { %3502 = vst [vmem:[#allocation45_spill] sm:$0xff] %v2552_v7 }
  0xb3   :  { %3503 = vst [vmem:[#allocation46_spill] sm:$0xff] %v2554_v2  ;;  %v135_v2 = vadd.f32 %v134_v11, %v44_v29 }
  0xb4   :  { %3504 = vst [vmem:[#allocation47_spill] sm:$0xff] %v2556_v62 }
  0xb6   :  { %v190_v1 = vpop.f32.mrf.mxu2  ;;  %v231_v5 = vpop.f32.mrf.mxu3 }
  0xb7   :  { %v2559_v16 = vadd.f32 %v190_v1, %v2514_v4  ;;  %v2562_v42 = vadd.f32 %v231_v5, %v2516_v14  ;;  %v111_v55 = vpop.f32.mrf.mxu0  ;;  %v152_v13 = vpop.f32.mrf.mxu1 }
  0xb8   :  { %v2564_v63 = vadd.f32 %v111_v55, %v43_v12  ;;  %v2566_v0 = vadd.f32 %v152_v13, %v44_v29 }
  0xb9   :  { %3505 = vst [vmem:[#allocation48_spill] sm:$0xff] %v2559_v16 }
  0xba   :  { %3506 = vst [vmem:[#allocation49_spill] sm:$0xff] %v2562_v42  ;;  %v94_v42 = vadd.f32 %v93_v10, %v43_v12 }
  0xbb   :  { %3507 = vst [vmem:[#allocation50_spill] sm:$0xff] %v2564_v63 }
  0xbc   :  { %3508 = vst [vmem:[#allocation51_spill] sm:$0xff] %v2566_v0 }
  0xbe   :  { %v193_v7 = vpop.f32.mrf.mxu2  ;;  %v234_v8 = vpop.f32.mrf.mxu3 }
  0xbf   :  { %v2569_v6 = vadd.f32 %v193_v7, %v2514_v4  ;;  %v2572_v3 = vadd.f32 %v234_v8, %v2516_v14  ;;  %v114_v62 = vpop.f32.mrf.mxu0  ;;  %v155_v1 = vpop.f32.mrf.mxu1 }
  0xc0   :  { %v2574_v16 = vadd.f32 %v114_v62, %v43_v12  ;;  %v2576_v5 = vadd.f32 %v155_v1, %v44_v29  ;;  %v176_v62 = vadd.f32 %v2506_v9, %v2514_v4 }
  0xc1   :  { %3509 = vst [vmem:[#allocation52_spill] sm:$0xff] %v2569_v6 }
  0xc2   :  { %3510 = vst [vmem:[#allocation53_spill] sm:$0xff] %v2572_v3 }
  0xc3   :  { %3511 = vst [vmem:[#allocation54_spill] sm:$0xff] %v2574_v16 }
  0xc4   :  { %3512 = vst [vmem:[#allocation55_spill] sm:$0xff] %v2576_v5 }
  0xc6   :  { %v196_v55 = vpop.f32.mrf.mxu2  ;;  %v237_v63 = vpop.f32.mrf.mxu3 }
  0xc7   :  { %v2579_v13 = vadd.f32 %v196_v55, %v2514_v4  ;;  %v2582_v0 = vadd.f32 %v237_v63, %v2516_v14  ;;  %v357_v7 = vpop.f32.mrf.mxu0  ;;  %v377_v6 = vpop.f32.mrf.mxu1 }
  0xc8   :  { %v420_v8 = vadd.f32 %v357_v7, %v94_v42  ;;  %v421_v3 = vadd.f32 %v377_v6, %v135_v2  ;;  %v217_v2 = vadd.f32 %v2508_v15, %v2516_v14 }
  0xc9   :  { %3513 = vst [vmem:[#allocation56_spill] sm:$0xff] %v2579_v13 }
  0xca   :  { %3514 = vst [vmem:[#allocation57_spill] sm:$0xff] %v2582_v0  ;;  %v1637_v61 = vmul.f32 -1.442695, %v420_v8  ;;  %v1638_v60 = vmul.f32 -1.442695, %v421_v3 }
  0xcc   :  { %1669 = vpow2.f32 %v1637_v61 }
  0xcd   :  { %1671 = vpow2.f32 %v1638_v60 }
  0xce   :  { %v397_v10 = vpop.f32.mrf.mxu2  ;;  %v417_v0 = vpop.f32.mrf.mxu3 }
  0xcf   :  { %v422_v11 = vadd.f32 %v397_v10, %v176_v62  ;;  %v423_v3 = vadd.f32 %v417_v0, %v217_v2 }
  0xd1   :  { %v1639_v12 = vmul.f32 -1.442695, %v422_v11 }
  0xd2   :  { %v1670_v29 = vpop.eup %1669 }
  0xd3   :  { %v1672_v1 = vpop.eup %1671  ;;  %v433_v55 = vadd.f32 1.0, %v1670_v29  ;;  %1673 = vpow2.f32 %v1639_v12 }
  0xd4   :  { %v434_v63 = vadd.f32 1.0, %v1672_v1 }
  0xd5   :  { %1675 = vrcp.f32 %v433_v55  ;;  %v447_v62 = vand.u32 2147483648, %v433_v55  ;;  %v445_v12 = vand.u32 2147483647, %v433_v55  ;;  %vm441_vm3 = vweird.f32 %v433_v55 }
  0xd6   :  { %1677 = vrcp.f32 %v434_v63  ;;  %v462_v10 = vand.u32 2147483648, %v434_v63  ;;  %v460_v1 = vand.u32 2147483647, %v434_v63  ;;  %vm456_vm4 = vweird.f32 %v434_v63 }
  0xd7   :  { %v448_v0 = vor.u32 1.1754944e-38, %v447_v62  ;;  %vm446_vm6 = vcmp.eq.f32.partialorder %v445_v12, 8.507059e+37 }
  0xd8   :  { %v463_v2 = vor.u32 1.1754944e-38, %v462_v10  ;;  %vm461_vm8 = vcmp.eq.f32.partialorder %v460_v1, 8.507059e+37 }
  0xd9   :  { %v1674_v42 = vpop.eup %1673 }
  0xda   :  { %v435_v61 = vadd.f32 1.0, %v1674_v42 }
  0xdb   :  { %v1676_v6 = vpop.eup %1675 }
  0xdc   :  { %v1678_v9 = vpop.eup %1677  ;;  %v437_v60 = vmul.f32 %v1676_v6, %v433_v55  ;;  %1679 = vrcp.f32 %v435_v61  ;;  %vm442_vm1 = vweird.f32 %v1676_v6  ;;  %vm471_vm10 = vweird.f32 %v435_v61 }
  0xdd   :  { %v452_v4 = vmul.f32 %v1678_v9, %v434_v63  ;;  %1681 = vtanh.f32 %v423_v3  ;;  %vm457_vm2 = vweird.f32 %v1678_v9  ;;  %vm443_vm5 = vmor %vm441_vm3, %vm442_vm1  ;;  %v477_v63 = vand.u32 2147483648, %v435_v61 }
  0xde   :  { %v438_v7 = vsub.f32 1.0, %v437_v60  ;;  %vm458_vm7 = vmor %vm456_vm4, %vm457_vm2 }
  0xdf   :  { %v453_v8 = vsub.f32 1.0, %v452_v4  ;;  %v478_v10 = vor.u32 1.1754944e-38, %v477_v63 }
  0xe0   :  { %v439_v11 = vmul.f32 %v1676_v6, %v438_v7 }
  0xe1   :  { %v454_v29 = vmul.f32 %v1678_v9, %v453_v8 }
  0xe2   :  { %v1680_v13 = vpop.eup %1679  ;;  %v440_v14 = vadd.f32 %v1676_v6, %v439_v11 }
  0xe3   :  { %v467_v15 = vmul.f32 %v1680_v13, %v435_v61  ;;  %v455_v42 = vadd.f32 %v1678_v9, %v454_v29  ;;  %v1682_v3 = vpop.eup %1681  ;;  %vm472_vm9 = vweird.f32 %v1680_v13 }
  0xe4   :  { %v444_v60 = vsel %vm443_vm5, %v1676_v6, %v440_v14  ;;  %v475_v6 = vand.u32 2147483647, %v435_v61  ;;  %vm473_vm11 = vmor %vm471_vm10, %vm472_vm9 }
  0xe5   :  { %v468_v4 = vsub.f32 1.0, %v467_v15  ;;  %v449_v7 = vsel %vm446_vm6, %v448_v0, %v444_v60  ;;  %v459_v5 = vsel %vm458_vm7, %v1678_v9, %v455_v42  ;;  %v3545_v15 = vld [vmem:[#allocation33_spill] sm:$0xff] }
  0xe6   :  { %v464_v8 = vsel %vm461_vm8, %v463_v2, %v459_v5  ;;  %v483_v16 = vmul.f32 %v1682_v3, %v449_v7  ;;  %vm476_vm12 = vcmp.eq.f32.partialorder %v475_v6, 8.507059e+37 }
  0xe7   :  { %v469_v59 = vmul.f32 %v1680_v13, %v468_v4  ;;  %v482_v58 = vmul.f32 0.0, %v464_v8 }
  0xe9   :  { %v2588_v11 = vadd.f32 %v483_v16, %v482_v58  ;;  %v470_v55 = vadd.f32 %v1680_v13, %v469_v59 }
  0xeb   :  { %1683 = vtanh.f32 %v2588_v11  ;;  %v474_v62 = vsel %vm473_vm11, %v1680_v13, %v470_v55 }
  0xec   :  { %v479_v9 = vsel %vm476_vm12, %v478_v10, %v474_v62 }
  0xf1   :  { %v1684_v12 = vpop.eup %1683 }
  0xf2   :  { %v2591_v29 = vmul.f32 %v1684_v12, %v479_v9 }
  0xf4   :  { %3515 = vst [vmem:[#allocation58_spill] sm:$0xff] %v2591_v29  ;;  %508 = vmatmul.f32.vlgmr.msra.gmra.mxu0 %v2591_v29  ;;  %528 = vmatmul.f32.vlgmr.msra.gmra.mxu1 %v2591_v29 }
  0xf5   :  { %548 = vmatmul.f32.vlgmr.msra.gmra.mxu2 %v2591_v29  ;;  %568 = vmatmul.f32.vlgmr.msra.gmra.mxu3 %v2591_v29  ;;  %v3008_v29 = vld [vmem:[%s3361_s2 + $0x58] sm:$0xff] }
  0xf6   :  { %798 = vmatpush.msra.mxu0 %v1941_v17  ;;  %818 = vmatpush.msra.mxu1 %v1946_v18  ;;  %v3516_v17 = vld [vmem:[#allocation4_spill] sm:$0xff]  ;;  %v3517_v18 = vld [vmem:[#allocation5_spill] sm:$0xff] }
  0xf7   :  { %838 = vmatpush.msra.mxu2 %v1953_v19  ;;  %858 = vmatpush.msra.mxu3 %v1958_v20  ;;  %v3518_v19 = vld [vmem:[#allocation6_spill] sm:$0xff]  ;;  %v3519_v20 = vld [vmem:[#allocation7_spill] sm:$0xff] }
  0xf8   :  { %799 = vmatpush.msra.mxu0 %v1965_v21  ;;  %819 = vmatpush.msra.mxu1 %v1970_v22  ;;  %v3520_v21 = vld [vmem:[#allocation8_spill] sm:$0xff]  ;;  %v3521_v22 = vld [vmem:[#allocation9_spill] sm:$0xff] }
  0xf9   :  { %839 = vmatpush.msra.mxu2 %v1977_v23  ;;  %859 = vmatpush.msra.mxu3 %v1982_v24  ;;  %v3522_v23 = vld [vmem:[#allocation10_spill] sm:$0xff]  ;;  %v3523_v24 = vld [vmem:[#allocation11_spill] sm:$0xff] }
  0xfa   :  { %800 = vmatpush.msra.mxu0 %v1988_v25  ;;  %820 = vmatpush.msra.mxu1 %v1993_v26  ;;  %v3524_v25 = vld [vmem:[#allocation12_spill] sm:$0xff]  ;;  %v3525_v26 = vld [vmem:[#allocation13_spill] sm:$0xff] }
  0xfb   :  { %840 = vmatpush.msra.mxu2 %v2001_v27  ;;  %860 = vmatpush.msra.mxu3 %v2006_v28  ;;  %v3526_v27 = vld [vmem:[#allocation14_spill] sm:$0xff]  ;;  %v3527_v28 = vld [vmem:[#allocation15_spill] sm:$0xff] }
  0xfc   :  { %801 = vmatpush.msra.mxu0 %v2018_v30  ;;  %821 = vmatpush.msra.mxu1 %v2023_v31  ;;  %v3528_v30 = vld [vmem:[#allocation16_spill] sm:$0xff]  ;;  %v3529_v31 = vld [vmem:[#allocation17_spill] sm:$0xff] }
  0xfd   :  { %841 = vmatpush.msra.mxu2 %v2032_v32  ;;  %861 = vmatpush.msra.mxu3 %v2037_v33  ;;  %v3530_v32 = vld [vmem:[#allocation18_spill] sm:$0xff]  ;;  %v3531_v33 = vld [vmem:[#allocation19_spill] sm:$0xff] }
  0xfe   :  { %802 = vmatpush.msra.mxu0 %v2044_v34  ;;  %822 = vmatpush.msra.mxu1 %v2049_v35  ;;  %v3532_v34 = vld [vmem:[#allocation20_spill] sm:$0xff]  ;;  %v3533_v35 = vld [vmem:[#allocation21_spill] sm:$0xff] }
  0xff   :  { %842 = vmatpush.msra.mxu2 %v2056_v36  ;;  %862 = vmatpush.msra.mxu3 %v2061_v37  ;;  %v3534_v36 = vld [vmem:[#allocation22_spill] sm:$0xff]  ;;  %v3535_v37 = vld [vmem:[#allocation23_spill] sm:$0xff] }
 0x100   :  { %803 = vmatpush.msra.mxu0 %v2067_v38  ;;  %823 = vmatpush.msra.mxu1 %v2072_v39  ;;  %v3536_v38 = vld [vmem:[#allocation24_spill] sm:$0xff]  ;;  %v3537_v39 = vld [vmem:[#allocation25_spill] sm:$0xff] }
 0x101   :  { %843 = vmatpush.msra.mxu2 %v2080_v40  ;;  %863 = vmatpush.msra.mxu3 %v2085_v41  ;;  %v3538_v40 = vld [vmem:[#allocation26_spill] sm:$0xff]  ;;  %v3539_v41 = vld [vmem:[#allocation27_spill] sm:$0xff]  ;;  %3566 = vst [vmem:[#allocation24_spill] sm:$0xff] %v3008_v29 }
 0x102   :  { %804 = vmatpush.msra.mxu0 %v2097_v43  ;;  %824 = vmatpush.msra.mxu1 %v2102_v44  ;;  %v3540_v43 = vld [vmem:[#allocation28_spill] sm:$0xff]  ;;  %v3541_v44 = vld [vmem:[#allocation29_spill] sm:$0xff] }
 0x103   :  { %844 = vmatpush.msra.mxu2 %v2111_v45  ;;  %864 = vmatpush.msra.mxu3 %v2116_v46 }
 0x104   :  { %805 = vmatpush.msra.mxu0 %v2123_v47  ;;  %825 = vmatpush.msra.mxu1 %v2128_v48  ;;  %v3542_v47 = vld [vmem:[#allocation30_spill] sm:$0xff] }
 0x105   :  { %845 = vmatpush.msra.mxu2 %v2135_v49  ;;  %865 = vmatpush.msra.mxu3 %v2140_v50  ;;  %v3543_v49 = vld [vmem:[#allocation31_spill] sm:$0xff] }
 0x106   :  { %806 = vmatpush.msra.mxu0 %v2146_v51  ;;  %826 = vmatpush.msra.mxu1 %v2151_v52 }
 0x107   :  { %846 = vmatpush.msra.mxu2 %v2159_v53  ;;  %866 = vmatpush.msra.mxu3 %v2164_v54  ;;  %v3544_v54 = vld [vmem:[#allocation32_spill] sm:$0xff] }
 0x108   :  { %807 = vmatpush.msra.mxu0 %v2176_v56  ;;  %827 = vmatpush.msra.mxu1 %v2181_v57 }
 0x109   :  { %847 = vmatpush.msra.mxu2 %v3516_v17  ;;  %867 = vmatpush.msra.mxu3 %v3517_v18 }
 0x10a   :  { %808 = vmatpush.msra.mxu0 %v3518_v19  ;;  %828 = vmatpush.msra.mxu1 %v3519_v20 }
 0x10b   :  { %848 = vmatpush.msra.mxu2 %v3520_v21  ;;  %868 = vmatpush.msra.mxu3 %v3521_v22 }
 0x10c   :  { %809 = vmatpush.msra.mxu0 %v3522_v23  ;;  %829 = vmatpush.msra.mxu1 %v3523_v24 }
 0x10d   :  { %849 = vmatpush.msra.mxu2 %v3524_v25  ;;  %869 = vmatpush.msra.mxu3 %v3525_v26 }
 0x10e   :  { %810 = vmatpush.msra.mxu0 %v3526_v27  ;;  %830 = vmatpush.msra.mxu1 %v3527_v28 }
 0x10f   :  { %850 = vmatpush.msra.mxu2 %v3528_v30  ;;  %870 = vmatpush.msra.mxu3 %v3529_v31 }
 0x110   :  { %811 = vmatpush.msra.mxu0 %v3530_v32  ;;  %831 = vmatpush.msra.mxu1 %v3531_v33 }
 0x111   :  { %851 = vmatpush.msra.mxu2 %v3532_v34  ;;  %871 = vmatpush.msra.mxu3 %v3533_v35 }
 0x112   :  { %812 = vmatpush.msra.mxu0 %v3534_v36  ;;  %832 = vmatpush.msra.mxu1 %v3535_v37 }
 0x113   :  { %852 = vmatpush.msra.mxu2 %v3536_v38  ;;  %872 = vmatpush.msra.mxu3 %v3537_v39 }
 0x114   :  { %813 = vmatpush.msra.mxu0 %v3538_v40  ;;  %833 = vmatpush.msra.mxu1 %v3539_v41 }
 0x115   :  { %853 = vmatpush.msra.mxu2 %v3540_v43  ;;  %873 = vmatpush.msra.mxu3 %v3541_v44 }
 0x171   :  { %v509_v45 = vpop.f32.mrf.mxu0  ;;  %v529_v46 = vpop.f32.mrf.mxu1 }
 0x172   :  { %v572_v48 = vadd.f32 %v509_v45, %v3542_v47  ;;  %v573_v50 = vadd.f32 %v529_v46, %v3543_v49  ;;  %v2684_v46 = vld [vmem:[%s3361_s2 + $0x1e8] sm:$0xff]  ;;  %v2690_v47 = vld [vmem:[%s3361_s2 + $0x1f0] sm:$0xff]  ;;  %v2702_v49 = vld [vmem:[%s3361_s2 + $0x1c0] sm:$0xff] }
 0x174   :  { %v1640_v51 = vmul.f32 -1.442695, %v572_v48  ;;  %v1641_v52 = vmul.f32 -1.442695, %v573_v50  ;;  %v2696_v48 = vld [vmem:[%s3361_s2 + $0x1f8] sm:$0xff]  ;;  %v2708_v50 = vld [vmem:[%s3361_s2 + $0x1c8] sm:$0xff] }
 0x176   :  { %1685 = vpow2.f32 %v1640_v51  ;;  %v2714_v51 = vld [vmem:[%s3361_s2 + $0x1d0] sm:$0xff] }
 0x177   :  { %1687 = vpow2.f32 %v1641_v52  ;;  %v2720_v52 = vld [vmem:[%s3361_s2 + $0x1d8] sm:$0xff] }
 0x178   :  { %v549_v53 = vpop.f32.mrf.mxu2  ;;  %v569_v13 = vpop.f32.mrf.mxu3 }
 0x179   :  { %v574_v56 = vadd.f32 %v549_v53, %v3544_v54  ;;  %v575_v0 = vadd.f32 %v569_v13, %v3545_v15  ;;  %v2726_v53 = vld [vmem:[%s3361_s2 + $0x1a0] sm:$0xff]  ;;  %v2732_v54 = vld [vmem:[%s3361_s2 + $0x1a8] sm:$0xff] }
 0x17a   :  { %v2774_v13 = vld [vmem:[%s3361_s2 + $0x160] sm:$0xff] }
 0x17b   :  { %v1642_v57 = vmul.f32 -1.442695, %v574_v56  ;;  %v2738_v56 = vld [vmem:[%s3361_s2 + $0x1b0] sm:$0xff]  ;;  %v2798_v15 = vld [vmem:[%s3361_s2 + $0x140] sm:$0xff] }
 0x17c   :  { %v1686_v58 = vpop.eup %1685 }
 0x17d   :  { %v1688_v59 = vpop.eup %1687  ;;  %v585_v16 = vadd.f32 1.0, %v1686_v58  ;;  %1689 = vpow2.f32 %v1642_v57  ;;  %v2744_v57 = vld [vmem:[%s3361_s2 + $0x1b8] sm:$0xff]  ;;  %v2750_v58 = vld [vmem:[%s3361_s2 + $0x180] sm:$0xff] }
 0x17e   :  { %v586_v5 = vadd.f32 1.0, %v1688_v59  ;;  %v2756_v59 = vld [vmem:[%s3361_s2 + $0x188] sm:$0xff] }
 0x17f   :  { %1691 = vrcp.f32 %v585_v16  ;;  %v599_v7 = vand.u32 2147483648, %v585_v16  ;;  %v597_v63 = vand.u32 2147483647, %v585_v16  ;;  %vm593_vm15 = vweird.f32 %v585_v16 }
 0x180   :  { %1693 = vrcp.f32 %v586_v5  ;;  %v614_v8 = vand.u32 2147483648, %v586_v5  ;;  %v612_v62 = vand.u32 2147483647, %v586_v5  ;;  %vm608_vm0 = vweird.f32 %v586_v5 }
 0x181   :  { %v600_v17 = vor.u32 1.1754944e-38, %v599_v7  ;;  %vm598_vm3 = vcmp.eq.f32.partialorder %v597_v63, 8.507059e+37  ;;  %v2840_v7 = vld [vmem:[%s3361_s2 + $0x138] sm:$0xff]  ;;  %v2858_v63 = vld [vmem:[%s3361_s2 + $0x110] sm:$0xff] }
 0x182   :  { %v615_v19 = vor.u32 1.1754944e-38, %v614_v8  ;;  %vm613_vm4 = vcmp.eq.f32.partialorder %v612_v62, 8.507059e+37  ;;  %v2846_v8 = vld [vmem:[%s3361_s2 + $0x100] sm:$0xff] }
 0x183   :  { %v1690_v61 = vpop.eup %1689  ;;  %v2870_v62 = vld [vmem:[%s3361_s2 + $0xe0] sm:$0xff] }
 0x184   :  { %v587_v1 = vadd.f32 1.0, %v1690_v61  ;;  %v2780_v61 = vld [vmem:[%s3361_s2 + $0x168] sm:$0xff] }
 0x185   :  { %v1692_v14 = vpop.eup %1691 }
 0x186   :  { %v1694_v42 = vpop.eup %1693  ;;  %v589_v2 = vmul.f32 %v1692_v14, %v585_v16  ;;  %1695 = vrcp.f32 %v587_v1  ;;  %vm594_vm13 = vweird.f32 %v1692_v14  ;;  %v629_v32 = vand.u32 2147483648, %v587_v1  ;;  %v2762_v16 = vld [vmem:[%s3361_s2 + $0x190] sm:$0xff] }
 0x187   :  { %v604_v60 = vmul.f32 %v1694_v42, %v586_v5  ;;  %1697 = vtanh.f32 %v575_v0  ;;  %vm609_vm14 = vweird.f32 %v1694_v42  ;;  %vm595_vm1 = vmor %vm593_vm15, %vm594_vm13  ;;  %vm623_vm6 = vweird.f32 %v587_v1  ;;  %v2768_v5 = vld [vmem:[%s3361_s2 + $0x198] sm:$0xff]  ;;  %v2804_v0 = vld [vmem:[%s3361_s2 + $0x148] sm:$0xff] }
 0x188   :  { %v590_v3 = vsub.f32 1.0, %v589_v2  ;;  %vm610_vm2 = vmor %vm608_vm0, %vm609_vm14  ;;  %v627_v33 = vand.u32 2147483647, %v587_v1  ;;  %v630_v35 = vor.u32 1.1754944e-38, %v629_v32  ;;  %v2816_v2 = vld [vmem:[%s3361_s2 + $0x158] sm:$0xff]  ;;  %v2972_v32 = vld [vmem:[%s3361_s2 + $0x68] sm:$0xff] }
 0x189   :  { %v605_v4 = vsub.f32 1.0, %v604_v60  ;;  %v2822_v60 = vld [vmem:[%s3361_s2 + $0x120] sm:$0xff]  ;;  %3560 = vst [vmem:[#allocation18_spill] sm:$0xff] %v2972_v32 }
 0x18a   :  { %v591_v55 = vmul.f32 %v1692_v14, %v590_v3  ;;  %vm628_vm8 = vcmp.eq.f32.partialorder %v627_v33, 8.507059e+37  ;;  %v2828_v3 = vld [vmem:[%s3361_s2 + $0x128] sm:$0xff]  ;;  %v2978_v33 = vld [vmem:[%s3361_s2 + $0x70] sm:$0xff] }
 0x18b   :  { %v606_v6 = vmul.f32 %v1694_v42, %v605_v4  ;;  %v2834_v4 = vld [vmem:[%s3361_s2 + $0x130] sm:$0xff]  ;;  %3561 = vst [vmem:[#allocation19_spill] sm:$0xff] %v2978_v33 }
 0x18c   :  { %v1696_v10 = vpop.eup %1695  ;;  %v592_v12 = vadd.f32 %v1692_v14, %v591_v55  ;;  %v2852_v55 = vld [vmem:[%s3361_s2 + $0x108] sm:$0xff] }
 0x18d   :  { %v619_v9 = vmul.f32 %v1696_v10, %v587_v1  ;;  %v607_v18 = vadd.f32 %v1694_v42, %v606_v6  ;;  %v1698_v21 = vpop.eup %1697  ;;  %vm624_vm5 = vweird.f32 %v1696_v10  ;;  %v2786_v1 = vld [vmem:[%s3361_s2 + $0x170] sm:$0xff]  ;;  %v2864_v6 = vld [vmem:[%s3361_s2 + $0x118] sm:$0xff] }
 0x18e   :  { %v596_v20 = vsel %vm595_vm1, %v1692_v14, %v592_v12  ;;  %vm625_vm7 = vmor %vm623_vm6, %vm624_vm5  ;;  %v2792_v14 = vld [vmem:[%s3361_s2 + $0x178] sm:$0xff]  ;;  %v2882_v12 = vld [vmem:[%s3361_s2 + $0xf0] sm:$0xff] }
 0x18f   :  { %v620_v22 = vsub.f32 1.0, %v619_v9  ;;  %v601_v23 = vsel %vm598_vm3, %v600_v17, %v596_v20  ;;  %v611_v24 = vsel %vm610_vm2, %v1694_v42, %v607_v18  ;;  %v2810_v42 = vld [vmem:[%s3361_s2 + $0x150] sm:$0xff]  ;;  %v2888_v9 = vld [vmem:[%s3361_s2 + $0xf8] sm:$0xff]  ;;  %v2894_v17 = vld [vmem:[%s3361_s2 + $0xc0] sm:$0xff] }
 0x190   :  { %v616_v25 = vsel %vm613_vm4, %v615_v19, %v611_v24  ;;  %v635_v26 = vmul.f32 %v1698_v21, %v601_v23  ;;  %3547 = vst [vmem:[#allocation5_spill] sm:$0xff] %v2894_v17  ;;  %v2900_v18 = vld [vmem:[%s3361_s2 + $0xc8] sm:$0xff]  ;;  %v2906_v19 = vld [vmem:[%s3361_s2 + $0xd0] sm:$0xff]  ;;  %v2912_v20 = vld [vmem:[%s3361_s2 + $0xd8] sm:$0xff] }
 0x191   :  { %v621_v27 = vmul.f32 %v1696_v10, %v620_v22  ;;  %v634_v28 = vmul.f32 %v616_v25, %v2588_v11  ;;  %v2678_v11 = vld [vmem:[%s3361_s2 + $0x1e0] sm:$0xff]  ;;  %3548 = vst [vmem:[#allocation6_spill] sm:$0xff] %v2900_v18  ;;  %v2924_v22 = vld [vmem:[%s3361_s2 + $0xa8] sm:$0xff]  ;;  %v2930_v23 = vld [vmem:[%s3361_s2 + $0xb0] sm:$0xff] }
 0x192   :  { %3549 = vst [vmem:[#allocation7_spill] sm:$0xff] %v2906_v19  ;;  %v2918_v21 = vld [vmem:[%s3361_s2 + $0xa0] sm:$0xff]  ;;  %v2936_v24 = vld [vmem:[%s3361_s2 + $0xb8] sm:$0xff] }
 0x193   :  { %v2666_v30 = vadd.f32 %v635_v26, %v634_v28  ;;  %v622_v31 = vadd.f32 %v1696_v10, %v621_v27  ;;  %3550 = vst [vmem:[#allocation8_spill] sm:$0xff] %v2912_v20  ;;  %v2942_v25 = vld [vmem:[%s3361_s2 + $0x80] sm:$0xff]  ;;  %v2948_v26 = vld [vmem:[%s3361_s2 + $0x88] sm:$0xff]  ;;  %v2954_v27 = vld [vmem:[%s3361_s2 + $0x90] sm:$0xff] }
 0x194   :  { %3551 = vst [vmem:[#allocation9_spill] sm:$0xff] %v2918_v21  ;;  %v2960_v28 = vld [vmem:[%s3361_s2 + $0x98] sm:$0xff] }
 0x195   :  { %1699 = vtanh.f32 %v2666_v30  ;;  %v626_v34 = vsel %vm625_vm7, %v1696_v10, %v622_v31  ;;  %v2876_v10 = vld [vmem:[%s3361_s2 + $0xe8] sm:$0xff]  ;;  %3552 = vst [vmem:[#allocation10_spill] sm:$0xff] %v2924_v22  ;;  %v2966_v31 = vld [vmem:[%s3361_s2 + $0x60] sm:$0xff] }
 0x196   :  { %v631_v37 = vsel %vm628_vm8, %v630_v35, %v626_v34  ;;  %3553 = vst [vmem:[#allocation11_spill] sm:$0xff] %v2930_v23  ;;  %v2984_v34 = vld [vmem:[%s3361_s2 + $0x78] sm:$0xff]  ;;  %v2990_v35 = vld [vmem:[%s3361_s2 + $0x40] sm:$0xff] }
 0x197   :  { %3554 = vst [vmem:[#allocation12_spill] sm:$0xff] %v2936_v24 }
 0x198   :  { %3555 = vst [vmem:[#allocation13_spill] sm:$0xff] %v2942_v25 }
 0x199   :  { %3556 = vst [vmem:[#allocation14_spill] sm:$0xff] %v2948_v26 }
 0x19a   :  { %3557 = vst [vmem:[#allocation15_spill] sm:$0xff] %v2954_v27 }
 0x19b   :  { %v1700_v36 = vpop.eup %1699  ;;  %3558 = vst [vmem:[#allocation16_spill] sm:$0xff] %v2960_v28 }
 0x19c   :  { %v2669_v45 = vmul.f32 %v1700_v36, %v631_v37  ;;  %3559 = vst [vmem:[#allocation17_spill] sm:$0xff] %v2966_v31  ;;  %v2996_v36 = vld [vmem:[%s3361_s2 + $0x48] sm:$0xff]  ;;  %v3002_v37 = vld [vmem:[%s3361_s2 + $0x50] sm:$0xff] }
 0x19d   :  { %3562 = vst [vmem:[#allocation20_spill] sm:$0xff] %v2984_v34 }
 0x19e   :  { %3546 = vst [vmem:[#allocation4_spill] sm:$0xff] %v2669_v45  ;;  %661 = vmatmul.f32.vlgmr.msrb.gmra.mxu0 %v2669_v45  ;;  %681 = vmatmul.f32.vlgmr.msrb.gmra.mxu1 %v2669_v45 }
 0x19f   :  { %701 = vmatmul.f32.vlgmr.msrb.gmra.mxu2 %v2669_v45  ;;  %721 = vmatmul.f32.vlgmr.msrb.gmra.mxu3 %v2669_v45  ;;  %3563 = vst [vmem:[#allocation21_spill] sm:$0xff] %v2990_v35  ;;  %v3014_v45 = vld [vmem:[%s3361_s2 + $0x20] sm:$0xff] }
 0x1a0   :  { %951 = vmatpush.msrb.mxu0 %v2678_v11  ;;  %971 = vmatpush.msrb.mxu1 %v2684_v46  ;;  %3564 = vst [vmem:[#allocation22_spill] sm:$0xff] %v2996_v36 }
 0x1a1   :  { %991 = vmatpush.msrb.mxu2 %v2690_v47  ;;  %1011 = vmatpush.msrb.mxu3 %v2696_v48  ;;  %3565 = vst [vmem:[#allocation23_spill] sm:$0xff] %v3002_v37 }
 0x1a2   :  { %952 = vmatpush.msrb.mxu0 %v2702_v49  ;;  %972 = vmatpush.msrb.mxu1 %v2708_v50  ;;  %3567 = vst [vmem:[#allocation25_spill] sm:$0xff] %v3014_v45 }
 0x1a3   :  { %992 = vmatpush.msrb.mxu2 %v2714_v51  ;;  %1012 = vmatpush.msrb.mxu3 %v2720_v52 }
 0x1a4   :  { %953 = vmatpush.msrb.mxu0 %v2726_v53  ;;  %973 = vmatpush.msrb.mxu1 %v2732_v54 }
 0x1a5   :  { %993 = vmatpush.msrb.mxu2 %v2738_v56  ;;  %1013 = vmatpush.msrb.mxu3 %v2744_v57 }
 0x1a6   :  { %954 = vmatpush.msrb.mxu0 %v2750_v58  ;;  %974 = vmatpush.msrb.mxu1 %v2756_v59 }
 0x1a7   :  { %994 = vmatpush.msrb.mxu2 %v2762_v16  ;;  %1014 = vmatpush.msrb.mxu3 %v2768_v5 }
 0x1a8   :  { %955 = vmatpush.msrb.mxu0 %v2774_v13  ;;  %975 = vmatpush.msrb.mxu1 %v2780_v61 }
 0x1a9   :  { %995 = vmatpush.msrb.mxu2 %v2786_v1  ;;  %1015 = vmatpush.msrb.mxu3 %v2792_v14 }
 0x1aa   :  { %956 = vmatpush.msrb.mxu0 %v2798_v15  ;;  %976 = vmatpush.msrb.mxu1 %v2804_v0 }
 0x1ab   :  { %996 = vmatpush.msrb.mxu2 %v2810_v42  ;;  %1016 = vmatpush.msrb.mxu3 %v2816_v2 }
 0x1ac   :  { %957 = vmatpush.msrb.mxu0 %v2822_v60  ;;  %977 = vmatpush.msrb.mxu1 %v2828_v3 }
 0x1ad   :  { %997 = vmatpush.msrb.mxu2 %v2834_v4  ;;  %1017 = vmatpush.msrb.mxu3 %v2840_v7 }
 0x1ae   :  { %958 = vmatpush.msrb.mxu0 %v2846_v8  ;;  %978 = vmatpush.msrb.mxu1 %v2852_v55 }
 0x1af   :  { %998 = vmatpush.msrb.mxu2 %v2858_v63  ;;  %1018 = vmatpush.msrb.mxu3 %v2864_v6 }
 0x1b0   :  { %959 = vmatpush.msrb.mxu0 %v2870_v62  ;;  %979 = vmatpush.msrb.mxu1 %v2876_v10 }
 0x1b1   :  { %999 = vmatpush.msrb.mxu2 %v2882_v12  ;;  %1019 = vmatpush.msrb.mxu3 %v2888_v9 }
 0x1b2   :  { %960 = vmatpush.msrb.mxu0 %v2894_v17  ;;  %980 = vmatpush.msrb.mxu1 %v2900_v18 }
 0x1b3   :  { %1000 = vmatpush.msrb.mxu2 %v2906_v19  ;;  %1020 = vmatpush.msrb.mxu3 %v2912_v20 }
 0x1b4   :  { %961 = vmatpush.msrb.mxu0 %v2918_v21  ;;  %981 = vmatpush.msrb.mxu1 %v2924_v22 }
 0x1b5   :  { %1001 = vmatpush.msrb.mxu2 %v2930_v23  ;;  %1021 = vmatpush.msrb.mxu3 %v2936_v24 }
 0x1b6   :  { %962 = vmatpush.msrb.mxu0 %v2942_v25  ;;  %982 = vmatpush.msrb.mxu1 %v2948_v26 }
 0x1b7   :  { %1002 = vmatpush.msrb.mxu2 %v2954_v27  ;;  %1022 = vmatpush.msrb.mxu3 %v2960_v28 }
 0x1b8   :  { %963 = vmatpush.msrb.mxu0 %v2966_v31  ;;  %983 = vmatpush.msrb.mxu1 %v2972_v32 }
 0x1b9   :  { %1003 = vmatpush.msrb.mxu2 %v2978_v33  ;;  %1023 = vmatpush.msrb.mxu3 %v2984_v34  ;;  %v3570_v34 = vld [vmem:[#allocation35_spill] sm:$0xff] }
 0x1ba   :  { %964 = vmatpush.msrb.mxu0 %v2990_v35  ;;  %984 = vmatpush.msrb.mxu1 %v2996_v36  ;;  %v3020_v36 = vld [vmem:[%s3361_s2 + $0x28] sm:$0xff] }
 0x1bb   :  { %1004 = vmatpush.msrb.mxu2 %v3002_v37  ;;  %1024 = vmatpush.msrb.mxu3 %v3008_v29  ;;  %3568 = vst [vmem:[#allocation26_spill] sm:$0xff] %v3020_v36  ;;  %v3569_v37 = vld [vmem:[#allocation34_spill] sm:$0xff] }
 0x1bc   :  { %965 = vmatpush.msrb.mxu0 %v3014_v45  ;;  %985 = vmatpush.msrb.mxu1 %v3020_v36 }
 0x1bd   :  { %1005 = vmatpush.msrb.mxu2 %v3536_v38  ;;  %1025 = vmatpush.msrb.mxu3 %v3537_v39  ;;  %v3571_v39 = vld [vmem:[#allocation36_spill] sm:$0xff] }
 0x1be   :  { %966 = vmatpush.msrb.mxu0 %v3538_v40  ;;  %986 = vmatpush.msrb.mxu1 %v3539_v41 }
 0x1bf   :  { %1006 = vmatpush.msrb.mxu2 %v3540_v43  ;;  %1026 = vmatpush.msrb.mxu3 %v3541_v44 }
 0x21b   :  { %v662_v45 = vpop.f32.mrf.mxu0  ;;  %v682_v29 = vpop.f32.mrf.mxu1 }
 0x21c   :  { %v725_v35 = vadd.f32 %v662_v45, %v3569_v37  ;;  %v726_v33 = vadd.f32 %v682_v29, %v3570_v34  ;;  %v3572_v29 = vld [vmem:[#allocation37_spill] sm:$0xff] }
 0x21e   :  { %v1643_v32 = vmul.f32 -1.442695, %v725_v35  ;;  %v1644_v36 = vmul.f32 -1.442695, %v726_v33 }
 0x220   :  { %1701 = vpow2.f32 %v1643_v32 }
 0x221   :  { %1703 = vpow2.f32 %v1644_v36 }
 0x222   :  { %v702_v38 = vpop.f32.mrf.mxu2  ;;  %v722_v44 = vpop.f32.mrf.mxu3 }
 0x223   :  { %v727_v31 = vadd.f32 %v702_v38, %v3571_v39  ;;  %v728_v34 = vadd.f32 %v722_v44, %v3572_v29 }
 0x225   :  { %v1645_v40 = vmul.f32 -1.442695, %v727_v31 }
 0x226   :  { %v1702_v28 = vpop.eup %1701 }
 0x227   :  { %v1704_v41 = vpop.eup %1703  ;;  %v738_v27 = vadd.f32 1.0, %v1702_v28  ;;  %1705 = vpow2.f32 %v1645_v40 }
 0x228   :  { %v739_v43 = vadd.f32 1.0, %v1704_v41 }
 0x229   :  { %1707 = vrcp.f32 %v738_v27  ;;  %v752_v31 = vand.u32 2147483648, %v738_v27  ;;  %v750_v40 = vand.u32 2147483647, %v738_v27  ;;  %vm746_vm11 = vweird.f32 %v738_v27 }
 0x22a   :  { %1709 = vrcp.f32 %v739_v43  ;;  %v767_v39 = vand.u32 2147483648, %v739_v43  ;;  %v765_v25 = vand.u32 2147483647, %v739_v43  ;;  %vm761_vm12 = vweird.f32 %v739_v43 }
 0x22b   :  { %v753_v29 = vor.u32 1.1754944e-38, %v752_v31  ;;  %vm751_vm15 = vcmp.eq.f32.partialorder %v750_v40, 8.507059e+37 }
 0x22c   :  { %vm766_vm0 = vcmp.eq.f32.partialorder %v765_v25, 8.507059e+37 }
 0x22d   :  { %v1706_v26 = vpop.eup %1705 }
 0x22e   :  { %v740_v45 = vadd.f32 1.0, %v1706_v26 }
 0x22f   :  { %v1708_v37 = vpop.eup %1707 }
 0x230   :  { %v1710_v33 = vpop.eup %1709  ;;  %v742_v32 = vmul.f32 %v1708_v37, %v738_v27  ;;  %1711 = vrcp.f32 %v740_v45  ;;  %vm747_vm9 = vweird.f32 %v1708_v37  ;;  %v782_v31 = vand.u32 2147483648, %v740_v45 }
 0x231   :  { %v757_v35 = vmul.f32 %v1710_v33, %v739_v43  ;;  %1713 = vtanh.f32 %v728_v34  ;;  %vm762_vm10 = vweird.f32 %v1710_v33  ;;  %vm748_vm13 = vmor %vm746_vm11, %vm747_vm9  ;;  %vm776_vm2 = vweird.f32 %v740_v45 }
 0x232   :  { %v743_v36 = vsub.f32 1.0, %v742_v32  ;;  %vm763_vm14 = vmor %vm761_vm12, %vm762_vm10  ;;  %v768_v32 = vor.u32 1.1754944e-38, %v767_v39  ;;  %v783_v40 = vor.u32 1.1754944e-38, %v782_v31  ;;  %v3592_v31 = vld [vmem:[#allocation25_spill] sm:$0xff] }
 0x233   :  { %v758_v38 = vsub.f32 1.0, %v757_v35 }
 0x234   :  { %v744_v28 = vmul.f32 %v1708_v37, %v743_v36 }
 0x235   :  { %v759_v41 = vmul.f32 %v1710_v33, %v758_v38 }
 0x236   :  { %v1712_v24 = vpop.eup %1711  ;;  %v745_v26 = vadd.f32 %v1708_v37, %v744_v28 }
 0x237   :  { %v772_v44 = vmul.f32 %v1712_v24, %v740_v45  ;;  %v760_v23 = vadd.f32 %v1710_v33, %v759_v41  ;;  %v1714_v34 = vpop.eup %1713  ;;  %vm777_vm1 = vweird.f32 %v1712_v24  ;;  %v3581_v41 = vld [vmem:[#allocation14_spill] sm:$0xff] }
 0x238   :  { %v749_v35 = vsel %vm748_vm13, %v1708_v37, %v745_v26  ;;  %v780_v37 = vand.u32 2147483647, %v740_v45  ;;  %vm778_vm3 = vmor %vm776_vm2, %vm777_vm1  ;;  %v3579_v45 = vld [vmem:[#allocation12_spill] sm:$0xff]  ;;  %v3582_v26 = vld [vmem:[#allocation15_spill] sm:$0xff] }
 0x239   :  { %v773_v22 = vsub.f32 1.0, %v772_v44  ;;  %v754_v36 = vsel %vm751_vm15, %v753_v29, %v749_v35  ;;  %v764_v21 = vsel %vm763_vm14, %v1710_v33, %v760_v23  ;;  %v3580_v33 = vld [vmem:[#allocation13_spill] sm:$0xff]  ;;  %v3583_v44 = vld [vmem:[#allocation16_spill] sm:$0xff]  ;;  %v3586_v35 = vld [vmem:[#allocation19_spill] sm:$0xff] }
 0x23a   :  { %v769_v38 = vsel %vm766_vm0, %v768_v32, %v764_v21  ;;  %v788_v20 = vmul.f32 %v1714_v34, %v754_v36  ;;  %vm781_vm4 = vcmp.eq.f32.partialorder %v780_v37, 8.507059e+37  ;;  %v3584_v29 = vld [vmem:[#allocation17_spill] sm:$0xff]  ;;  %v3585_v32 = vld [vmem:[#allocation18_spill] sm:$0xff]  ;;  %v3587_v34 = vld [vmem:[#allocation20_spill] sm:$0xff] }
 0x23b   :  { %v774_v19 = vmul.f32 %v1712_v24, %v773_v22  ;;  %v787_v28 = vmul.f32 %v769_v38, %v2666_v30  ;;  %v3574_v30 = vld [vmem:[#allocation7_spill] sm:$0xff]  ;;  %v3577_v22 = vld [vmem:[#allocation10_spill] sm:$0xff]  ;;  %v3588_v36 = vld [vmem:[#allocation21_spill] sm:$0xff] }
 0x23c   :  { %v3589_v38 = vld [vmem:[#allocation22_spill] sm:$0xff] }
 0x23d   :  { %v3034_v27 = vadd.f32 %v788_v20, %v787_v28  ;;  %v775_v43 = vadd.f32 %v1712_v24, %v774_v19  ;;  %v3575_v19 = vld [vmem:[#allocation8_spill] sm:$0xff]  ;;  %v3576_v20 = vld [vmem:[#allocation9_spill] sm:$0xff]  ;;  %v3590_v28 = vld [vmem:[#allocation23_spill] sm:$0xff] }
 0x23e   :  { %v3593_v37 = vld [vmem:[#allocation26_spill] sm:$0xff] }
 0x23f   :  { %1715 = vtanh.f32 %v3034_v27  ;;  %v779_v39 = vsel %vm778_vm3, %v1712_v24, %v775_v43  ;;  %v3578_v24 = vld [vmem:[#allocation11_spill] sm:$0xff]  ;;  %v3591_v43 = vld [vmem:[#allocation24_spill] sm:$0xff] }
 0x240   :  { %v784_v25 = vsel %vm781_vm4, %v783_v40, %v779_v39  ;;  %v3104_v39 = vld [vmem:[%s3361_s2 + $0x30] sm:$0xff]  ;;  %v3110_v40 = vld [vmem:[%s3361_s2 + $0x38] sm:$0xff] }
 0x241   :  { %3594 = vst [vmem:[#allocation28_spill] sm:$0xff] %v3104_v39 }
 0x242   :  { %3595 = vst [vmem:[#allocation29_spill] sm:$0xff] %v3110_v40 }
 0x245   :  { %v1716_v23 = vpop.eup %1715 }
 0x246   :  { %v3037_v21 = vmul.f32 %v1716_v23, %v784_v25  ;;  %v3116_v23 = vld [vmem:[%s3361_s2] sm:$0xff]  ;;  %v3122_v25 = vld [vmem:[%s3361_s2 + $0x8] sm:$0xff] }
 0x247   :  { %3596 = vst [vmem:[#allocation30_spill] sm:$0xff] %v3116_v23 }
 0x248   :  { %3573 = vst [vmem:[#allocation27_spill] sm:$0xff] %v3037_v21  ;;  %814 = vmatmul.f32.vlgmr.msra.gmra.mxu0 %v3037_v21  ;;  %834 = vmatmul.f32.vlgmr.msra.gmra.mxu1 %v3037_v21 }
 0x249   :  { %854 = vmatmul.f32.vlgmr.msra.gmra.mxu2 %v3037_v21  ;;  %874 = vmatmul.f32.vlgmr.msra.gmra.mxu3 %v3037_v21  ;;  %3597 = vst [vmem:[#allocation31_spill] sm:$0xff] %v3122_v25  ;;  %v3128_v21 = vld [vmem:[%s3361_s2 + $0x10] sm:$0xff] }
 0x24a   :  { %1104 = vmatpush.msra.mxu0 %v2678_v11  ;;  %1124 = vmatpush.msra.mxu1 %v2684_v46  ;;  %3598 = vst [vmem:[#allocation32_spill] sm:$0xff] %v3128_v21 }
 0x24b   :  { %1144 = vmatpush.msra.mxu2 %v2690_v47  ;;  %1164 = vmatpush.msra.mxu3 %v2696_v48 }
 0x24c   :  { %1105 = vmatpush.msra.mxu0 %v2702_v49  ;;  %1125 = vmatpush.msra.mxu1 %v2708_v50 }
 0x24d   :  { %1145 = vmatpush.msra.mxu2 %v2714_v51  ;;  %1165 = vmatpush.msra.mxu3 %v2720_v52 }
 0x24e   :  { %1106 = vmatpush.msra.mxu0 %v2726_v53  ;;  %1126 = vmatpush.msra.mxu1 %v2732_v54 }
 0x24f   :  { %1146 = vmatpush.msra.mxu2 %v2738_v56  ;;  %1166 = vmatpush.msra.mxu3 %v2744_v57 }
 0x250   :  { %1107 = vmatpush.msra.mxu0 %v2750_v58  ;;  %1127 = vmatpush.msra.mxu1 %v2756_v59 }
 0x251   :  { %1147 = vmatpush.msra.mxu2 %v2762_v16  ;;  %1167 = vmatpush.msra.mxu3 %v2768_v5 }
 0x252   :  { %1108 = vmatpush.msra.mxu0 %v2774_v13  ;;  %1128 = vmatpush.msra.mxu1 %v2780_v61 }
 0x253   :  { %1148 = vmatpush.msra.mxu2 %v2786_v1  ;;  %1168 = vmatpush.msra.mxu3 %v2792_v14 }
 0x254   :  { %1109 = vmatpush.msra.mxu0 %v2798_v15  ;;  %1129 = vmatpush.msra.mxu1 %v2804_v0 }
 0x255   :  { %1149 = vmatpush.msra.mxu2 %v2810_v42  ;;  %1169 = vmatpush.msra.mxu3 %v2816_v2 }
 0x256   :  { %1110 = vmatpush.msra.mxu0 %v2822_v60  ;;  %1130 = vmatpush.msra.mxu1 %v2828_v3 }
 0x257   :  { %1150 = vmatpush.msra.mxu2 %v2834_v4  ;;  %1170 = vmatpush.msra.mxu3 %v2840_v7 }
 0x258   :  { %1111 = vmatpush.msra.mxu0 %v2846_v8  ;;  %1131 = vmatpush.msra.mxu1 %v2852_v55 }
 0x259   :  { %1151 = vmatpush.msra.mxu2 %v2858_v63  ;;  %1171 = vmatpush.msra.mxu3 %v2864_v6 }
 0x25a   :  { %1112 = vmatpush.msra.mxu0 %v2870_v62  ;;  %1132 = vmatpush.msra.mxu1 %v2876_v10 }
 0x25b   :  { %1152 = vmatpush.msra.mxu2 %v2882_v12  ;;  %1172 = vmatpush.msra.mxu3 %v2888_v9 }
 0x25c   :  { %1113 = vmatpush.msra.mxu0 %v2894_v17  ;;  %1133 = vmatpush.msra.mxu1 %v2900_v18 }
 0x25d   :  { %1153 = vmatpush.msra.mxu2 %v3574_v30  ;;  %1173 = vmatpush.msra.mxu3 %v3575_v19 }
 0x25e   :  { %1114 = vmatpush.msra.mxu0 %v3576_v20  ;;  %1134 = vmatpush.msra.mxu1 %v3577_v22 }
 0x25f   :  { %1154 = vmatpush.msra.mxu2 %v3578_v24  ;;  %1174 = vmatpush.msra.mxu3 %v3579_v45 }
 0x260   :  { %1115 = vmatpush.msra.mxu0 %v3580_v33  ;;  %1135 = vmatpush.msra.mxu1 %v3581_v41 }
 0x261   :  { %1155 = vmatpush.msra.mxu2 %v3582_v26  ;;  %1175 = vmatpush.msra.mxu3 %v3583_v44 }
 0x262   :  { %1116 = vmatpush.msra.mxu0 %v3584_v29  ;;  %1136 = vmatpush.msra.mxu1 %v3585_v32 }
 0x263   :  { %1156 = vmatpush.msra.mxu2 %v3586_v35  ;;  %1176 = vmatpush.msra.mxu3 %v3587_v34  ;;  %v3602_v34 = vld [vmem:[#allocation40_spill] sm:$0xff] }
 0x264   :  { %1117 = vmatpush.msra.mxu0 %v3588_v36  ;;  %1137 = vmatpush.msra.mxu1 %v3589_v38 }
 0x265   :  { %1157 = vmatpush.msra.mxu2 %v3590_v28  ;;  %1177 = vmatpush.msra.mxu3 %v3591_v43  ;;  %v3601_v43 = vld [vmem:[#allocation39_spill] sm:$0xff] }
 0x266   :  { %1118 = vmatpush.msra.mxu0 %v3592_v31  ;;  %1138 = vmatpush.msra.mxu1 %v3593_v37  ;;  %v3600_v37 = vld [vmem:[#allocation38_spill] sm:$0xff] }
 0x267   :  { %1158 = vmatpush.msra.mxu2 %v3104_v39  ;;  %1178 = vmatpush.msra.mxu3 %v3110_v40  ;;  %v3134_v40 = vld [vmem:[%s3361_s2 + $0x18] sm:$0xff] }
 0x268   :  { %1119 = vmatpush.msra.mxu0 %v3116_v23  ;;  %1139 = vmatpush.msra.mxu1 %v3122_v25  ;;  %3599 = vst [vmem:[#allocation33_spill] sm:$0xff] %v3134_v40 }
 0x269   :  { %1159 = vmatpush.msra.mxu2 %v3128_v21  ;;  %1179 = vmatpush.msra.mxu3 %v3134_v40 }
 0x2c5   :  { %v815_v23 = vpop.f32.mrf.mxu0  ;;  %v835_v39 = vpop.f32.mrf.mxu1 }
 0x2c6   :  { %v878_v31 = vadd.f32 %v815_v23, %v3600_v37  ;;  %v879_v25 = vadd.f32 %v835_v39, %v3601_v43  ;;  %v3603_v43 = vld [vmem:[#allocation41_spill] sm:$0xff] }
 0x2c8   :  { %v1646_v28 = vmul.f32 -1.442695, %v878_v31  ;;  %v1647_v38 = vmul.f32 -1.442695, %v879_v25 }
 0x2ca   :  { %1717 = vpow2.f32 %v1646_v28 }
 0x2cb   :  { %1719 = vpow2.f32 %v1647_v38 }
 0x2cc   :  { %v855_v36 = vpop.f32.mrf.mxu2  ;;  %v875_v40 = vpop.f32.mrf.mxu3 }
 0x2cd   :  { %v880_v21 = vadd.f32 %v855_v36, %v3602_v34  ;;  %v881_v31 = vadd.f32 %v875_v40, %v3603_v43 }
 0x2cf   :  { %v1648_v35 = vmul.f32 -1.442695, %v880_v21 }
 0x2d0   :  { %v1718_v32 = vpop.eup %1717 }
 0x2d1   :  { %v1720_v29 = vpop.eup %1719  ;;  %v891_v44 = vadd.f32 1.0, %v1718_v32  ;;  %1721 = vpow2.f32 %v1648_v35 }
 0x2d2   :  { %v892_v26 = vadd.f32 1.0, %v1720_v29 }
 0x2d3   :  { %1723 = vrcp.f32 %v891_v44  ;;  %v905_v21 = vand.u32 2147483648, %v891_v44  ;;  %v903_v29 = vand.u32 2147483647, %v891_v44  ;;  %vm899_vm7 = vweird.f32 %v891_v44 }
 0x2d4   :  { %1725 = vrcp.f32 %v892_v26  ;;  %v920_v36 = vand.u32 2147483648, %v892_v26  ;;  %v918_v33 = vand.u32 2147483647, %v892_v26  ;;  %vm914_vm8 = vweird.f32 %v892_v26 }
 0x2d5   :  { %v906_v43 = vor.u32 1.1754944e-38, %v905_v21  ;;  %vm904_vm11 = vcmp.eq.f32.partialorder %v903_v29, 8.507059e+37 }
 0x2d6   :  { %vm919_vm12 = vcmp.eq.f32.partialorder %v918_v33, 8.507059e+37 }
 0x2d7   :  { %v1722_v41 = vpop.eup %1721 }
 0x2d8   :  { %v893_v37 = vadd.f32 1.0, %v1722_v41 }
 0x2d9   :  { %v1724_v23 = vpop.eup %1723 }
 0x2da   :  { %v1726_v39 = vpop.eup %1725  ;;  %v895_v28 = vmul.f32 %v1724_v23, %v891_v44  ;;  %1727 = vrcp.f32 %v893_v37  ;;  %vm900_vm5 = vweird.f32 %v1724_v23  ;;  %v935_v21 = vand.u32 2147483648, %v893_v37 }
 0x2db   :  { %v910_v38 = vmul.f32 %v1726_v39, %v892_v26  ;;  %1729 = vtanh.f32 %v881_v31  ;;  %vm915_vm6 = vweird.f32 %v1726_v39  ;;  %vm901_vm9 = vmor %vm899_vm7, %vm900_vm5  ;;  %vm929_vm14 = vweird.f32 %v893_v37 }
 0x2dc   :  { %v896_v25 = vsub.f32 1.0, %v895_v28  ;;  %vm916_vm10 = vmor %vm914_vm8, %vm915_vm6  ;;  %v921_v28 = vor.u32 1.1754944e-38, %v920_v36  ;;  %v936_v29 = vor.u32 1.1754944e-38, %v935_v21  ;;  %v3622_v21 = vld [vmem:[#allocation25_spill] sm:$0xff] }
 0x2dd   :  { %v911_v34 = vsub.f32 1.0, %v910_v38 }
 0x2de   :  { %v897_v32 = vmul.f32 %v1724_v23, %v896_v25 }
 0x2df   :  { %v912_v35 = vmul.f32 %v1726_v39, %v911_v34 }
 0x2e0   :  { %v1728_v45 = vpop.eup %1727  ;;  %v898_v41 = vadd.f32 %v1724_v23, %v897_v32 }
 0x2e1   :  { %v925_v40 = vmul.f32 %v1728_v45, %v893_v37  ;;  %v913_v24 = vadd.f32 %v1726_v39, %v912_v35  ;;  %v1730_v31 = vpop.eup %1729  ;;  %vm930_vm13 = vweird.f32 %v1728_v45  ;;  %v3611_v35 = vld [vmem:[#allocation14_spill] sm:$0xff] }
 0x2e2   :  { %v902_v38 = vsel %vm901_vm9, %v1724_v23, %v898_v41  ;;  %v933_v23 = vand.u32 2147483647, %v893_v37  ;;  %vm931_vm15 = vmor %vm929_vm14, %vm930_vm13  ;;  %v3609_v37 = vld [vmem:[#allocation12_spill] sm:$0xff]  ;;  %v3612_v41 = vld [vmem:[#allocation15_spill] sm:$0xff] }
 0x2e3   :  { %v926_v22 = vsub.f32 1.0, %v925_v40  ;;  %v907_v25 = vsel %vm904_vm11, %v906_v43, %v902_v38  ;;  %v917_v20 = vsel %vm916_vm10, %v1726_v39, %v913_v24  ;;  %v3610_v39 = vld [vmem:[#allocation13_spill] sm:$0xff]  ;;  %v3613_v40 = vld [vmem:[#allocation16_spill] sm:$0xff]  ;;  %v3616_v38 = vld [vmem:[#allocation19_spill] sm:$0xff] }
 0x2e4   :  { %v922_v34 = vsel %vm919_vm12, %v921_v28, %v917_v20  ;;  %v941_v19 = vmul.f32 %v1730_v31, %v907_v25  ;;  %vm934_vm0 = vcmp.eq.f32.partialorder %v933_v23, 8.507059e+37  ;;  %v3614_v43 = vld [vmem:[#allocation17_spill] sm:$0xff]  ;;  %v3615_v28 = vld [vmem:[#allocation18_spill] sm:$0xff]  ;;  %v3617_v31 = vld [vmem:[#allocation20_spill] sm:$0xff] }
 0x2e5   :  { %v927_v30 = vmul.f32 %v1728_v45, %v926_v22  ;;  %v940_v32 = vmul.f32 %v922_v34, %v3034_v27  ;;  %v3604_v27 = vld [vmem:[#allocation7_spill] sm:$0xff]  ;;  %v3607_v22 = vld [vmem:[#allocation10_spill] sm:$0xff]  ;;  %v3618_v25 = vld [vmem:[#allocation21_spill] sm:$0xff] }
 0x2e6   :  { %v3619_v34 = vld [vmem:[#allocation22_spill] sm:$0xff] }
 0x2e7   :  { %v3142_v44 = vadd.f32 %v941_v19, %v940_v32  ;;  %v928_v26 = vadd.f32 %v1728_v45, %v927_v30  ;;  %v3605_v30 = vld [vmem:[#allocation8_spill] sm:$0xff]  ;;  %v3606_v19 = vld [vmem:[#allocation9_spill] sm:$0xff]  ;;  %v3620_v32 = vld [vmem:[#allocation23_spill] sm:$0xff] }
 0x2e8   :  { %v3623_v23 = vld [vmem:[#allocation26_spill] sm:$0xff] }
 0x2e9   :  { %1731 = vtanh.f32 %v3142_v44  ;;  %v932_v36 = vsel %vm931_vm15, %v1728_v45, %v928_v26  ;;  %v3608_v45 = vld [vmem:[#allocation11_spill] sm:$0xff]  ;;  %v3621_v26 = vld [vmem:[#allocation24_spill] sm:$0xff] }
 0x2ea   :  { %v937_v33 = vsel %vm934_vm0, %v936_v29, %v932_v36  ;;  %v3624_v36 = vld [vmem:[#allocation28_spill] sm:$0xff]  ;;  %v3625_v29 = vld [vmem:[#allocation29_spill] sm:$0xff] }
 0x2ef   :  { %v1732_v24 = vpop.eup %1731 }
 0x2f0   :  { %v3145_v20 = vmul.f32 %v1732_v24, %v937_v33  ;;  %v3626_v24 = vld [vmem:[#allocation30_spill] sm:$0xff]  ;;  %v3627_v33 = vld [vmem:[#allocation31_spill] sm:$0xff] }
 0x2f2   :  { %967 = vmatmul.f32.vlgmr.msrb.gmra.mxu0 %v3145_v20  ;;  %987 = vmatmul.f32.vlgmr.msrb.gmra.mxu1 %v3145_v20 }
 0x2f3   :  { %1007 = vmatmul.f32.vlgmr.msrb.gmra.mxu2 %v3145_v20  ;;  %1027 = vmatmul.f32.vlgmr.msrb.gmra.mxu3 %v3145_v20 }
 0x2f4   :  { %1257 = vmatpush.msrb.mxu0 %v2678_v11  ;;  %1277 = vmatpush.msrb.mxu1 %v2684_v46 }
 0x2f5   :  { %1297 = vmatpush.msrb.mxu2 %v2690_v47  ;;  %1317 = vmatpush.msrb.mxu3 %v2696_v48 }
 0x2f6   :  { %1258 = vmatpush.msrb.mxu0 %v2702_v49  ;;  %1278 = vmatpush.msrb.mxu1 %v2708_v50 }
 0x2f7   :  { %1298 = vmatpush.msrb.mxu2 %v2714_v51  ;;  %1318 = vmatpush.msrb.mxu3 %v2720_v52 }
 0x2f8   :  { %1259 = vmatpush.msrb.mxu0 %v2726_v53  ;;  %1279 = vmatpush.msrb.mxu1 %v2732_v54 }
 0x2f9   :  { %1299 = vmatpush.msrb.mxu2 %v2738_v56  ;;  %1319 = vmatpush.msrb.mxu3 %v2744_v57 }
 0x2fa   :  { %1260 = vmatpush.msrb.mxu0 %v2750_v58  ;;  %1280 = vmatpush.msrb.mxu1 %v2756_v59 }
 0x2fb   :  { %1300 = vmatpush.msrb.mxu2 %v2762_v16  ;;  %1320 = vmatpush.msrb.mxu3 %v2768_v5 }
 0x2fc   :  { %1261 = vmatpush.msrb.mxu0 %v2774_v13  ;;  %1281 = vmatpush.msrb.mxu1 %v2780_v61 }
 0x2fd   :  { %1301 = vmatpush.msrb.mxu2 %v2786_v1  ;;  %1321 = vmatpush.msrb.mxu3 %v2792_v14 }
 0x2fe   :  { %1262 = vmatpush.msrb.mxu0 %v2798_v15  ;;  %1282 = vmatpush.msrb.mxu1 %v2804_v0 }
 0x2ff   :  { %1302 = vmatpush.msrb.mxu2 %v2810_v42  ;;  %1322 = vmatpush.msrb.mxu3 %v2816_v2 }
 0x300   :  { %1263 = vmatpush.msrb.mxu0 %v2822_v60  ;;  %1283 = vmatpush.msrb.mxu1 %v2828_v3 }
 0x301   :  { %1303 = vmatpush.msrb.mxu2 %v2834_v4  ;;  %1323 = vmatpush.msrb.mxu3 %v2840_v7 }
 0x302   :  { %1264 = vmatpush.msrb.mxu0 %v2846_v8  ;;  %1284 = vmatpush.msrb.mxu1 %v2852_v55 }
 0x303   :  { %1304 = vmatpush.msrb.mxu2 %v2858_v63  ;;  %1324 = vmatpush.msrb.mxu3 %v2864_v6 }
 0x304   :  { %1265 = vmatpush.msrb.mxu0 %v2870_v62  ;;  %1285 = vmatpush.msrb.mxu1 %v2876_v10 }
 0x305   :  { %1305 = vmatpush.msrb.mxu2 %v2882_v12  ;;  %1325 = vmatpush.msrb.mxu3 %v2888_v9 }
 0x306   :  { %1266 = vmatpush.msrb.mxu0 %v2894_v17  ;;  %1286 = vmatpush.msrb.mxu1 %v2900_v18 }
 0x307   :  { %1306 = vmatpush.msrb.mxu2 %v3604_v27  ;;  %1326 = vmatpush.msrb.mxu3 %v3605_v30 }
 0x308   :  { %1267 = vmatpush.msrb.mxu0 %v3606_v19  ;;  %1287 = vmatpush.msrb.mxu1 %v3607_v22 }
 0x309   :  { %1307 = vmatpush.msrb.mxu2 %v3608_v45  ;;  %1327 = vmatpush.msrb.mxu3 %v3609_v37 }
 0x30a   :  { %1268 = vmatpush.msrb.mxu0 %v3610_v39  ;;  %1288 = vmatpush.msrb.mxu1 %v3611_v35 }
 0x30b   :  { %1308 = vmatpush.msrb.mxu2 %v3612_v41  ;;  %1328 = vmatpush.msrb.mxu3 %v3613_v40 }
 0x30c   :  { %1269 = vmatpush.msrb.mxu0 %v3614_v43  ;;  %1289 = vmatpush.msrb.mxu1 %v3615_v28  ;;  %v3631_v28 = vld [vmem:[#allocation43_spill] sm:$0xff] }
 0x30d   :  { %1309 = vmatpush.msrb.mxu2 %v3616_v38  ;;  %1329 = vmatpush.msrb.mxu3 %v3617_v31  ;;  %v3628_v31 = vld [vmem:[#allocation32_spill] sm:$0xff]  ;;  %v3630_v38 = vld [vmem:[#allocation42_spill] sm:$0xff] }
 0x30e   :  { %1270 = vmatpush.msrb.mxu0 %v3618_v25  ;;  %1290 = vmatpush.msrb.mxu1 %v3619_v34  ;;  %v3629_v25 = vld [vmem:[#allocation33_spill] sm:$0xff] }
 0x30f   :  { %1310 = vmatpush.msrb.mxu2 %v3620_v32  ;;  %1330 = vmatpush.msrb.mxu3 %v3621_v26 }
 0x310   :  { %1271 = vmatpush.msrb.mxu0 %v3622_v21  ;;  %1291 = vmatpush.msrb.mxu1 %v3623_v23 }
 0x311   :  { %1311 = vmatpush.msrb.mxu2 %v3624_v36  ;;  %1331 = vmatpush.msrb.mxu3 %v3625_v29  ;;  %v3632_v29 = vld [vmem:[#allocation44_spill] sm:$0xff] }
 0x312   :  { %1272 = vmatpush.msrb.mxu0 %v3626_v24  ;;  %1292 = vmatpush.msrb.mxu1 %v3627_v33 }
 0x313   :  { %1312 = vmatpush.msrb.mxu2 %v3628_v31  ;;  %1332 = vmatpush.msrb.mxu3 %v3629_v25 }
 0x36f   :  { %v968_v34 = vpop.f32.mrf.mxu0  ;;  %v988_v32 = vpop.f32.mrf.mxu1 }
 0x370   :  { %v1031_v26 = vadd.f32 %v968_v34, %v3630_v38  ;;  %v1032_v21 = vadd.f32 %v988_v32, %v3631_v28  ;;  %v3633_v28 = vld [vmem:[#allocation45_spill] sm:$0xff] }
 0x372   :  { %v1649_v43 = vmul.f32 -1.442695, %v1031_v26  ;;  %v1650_v23 = vmul.f32 -1.442695, %v1032_v21 }
 0x374   :  { %1733 = vpow2.f32 %v1649_v43 }
 0x375   :  { %1735 = vpow2.f32 %v1650_v23 }
 0x376   :  { %v1008_v36 = vpop.f32.mrf.mxu2  ;;  %v1028_v25 = vpop.f32.mrf.mxu3 }
 0x377   :  { %v1033_v40 = vadd.f32 %v1008_v36, %v3632_v29  ;;  %v1034_v32 = vadd.f32 %v1028_v25, %v3633_v28 }
 0x379   :  { %v1651_v24 = vmul.f32 -1.442695, %v1033_v40 }
 0x37a   :  { %v1734_v41 = vpop.eup %1733 }
 0x37b   :  { %v1736_v33 = vpop.eup %1735  ;;  %v1044_v35 = vadd.f32 1.0, %v1734_v41  ;;  %1737 = vpow2.f32 %v1651_v24 }
 0x37c   :  { %v1045_v31 = vadd.f32 1.0, %v1736_v33 }
 0x37d   :  { %1739 = vrcp.f32 %v1044_v35  ;;  %v1058_v40 = vand.u32 2147483648, %v1044_v35  ;;  %v1056_v24 = vand.u32 2147483647, %v1044_v35  ;;  %vm1052_vm3 = vweird.f32 %v1044_v35 }
 0x37e   :  { %1741 = vrcp.f32 %v1045_v31  ;;  %v1073_v29 = vand.u32 2147483648, %v1045_v31  ;;  %v1071_v37 = vand.u32 2147483647, %v1045_v31  ;;  %vm1067_vm4 = vweird.f32 %v1045_v31 }
 0x37f   :  { %v1059_v28 = vor.u32 1.1754944e-38, %v1058_v40  ;;  %vm1057_vm7 = vcmp.eq.f32.partialorder %v1056_v24, 8.507059e+37 }
 0x380   :  { %vm1072_vm8 = vcmp.eq.f32.partialorder %v1071_v37, 8.507059e+37 }
 0x381   :  { %v1738_v39 = vpop.eup %1737 }
 0x382   :  { %v1046_v38 = vadd.f32 1.0, %v1738_v39 }
 0x383   :  { %v1740_v34 = vpop.eup %1739 }
 0x384   :  { %v1742_v26 = vpop.eup %1741  ;;  %v1048_v43 = vmul.f32 %v1740_v34, %v1044_v35  ;;  %1743 = vrcp.f32 %v1046_v38  ;;  %vm1053_vm1 = vweird.f32 %v1740_v34  ;;  %v1088_v40 = vand.u32 2147483648, %v1046_v38 }
 0x385   :  { %v1063_v21 = vmul.f32 %v1742_v26, %v1045_v31  ;;  %1745 = vtanh.f32 %v1034_v32  ;;  %vm1068_vm2 = vweird.f32 %v1742_v26  ;;  %vm1054_vm5 = vmor %vm1052_vm3, %vm1053_vm1  ;;  %v1559_v31 = vlaneseq }
 0x386   :  { %v1049_v23 = vsub.f32 1.0, %v1048_v43  ;;  %vm1069_vm6 = vmor %vm1067_vm4, %vm1068_vm2  ;;  %v1074_v43 = vor.u32 1.1754944e-38, %v1073_v29  ;;  %vm1082_vm10 = vweird.f32 %v1046_v38  ;;  %v1089_v37 = vor.u32 1.1754944e-38, %v1088_v40 }
 0x387   :  { %v1064_v36 = vsub.f32 1.0, %v1063_v21  ;;  %v3223_v29 = vand.u32 127, %v1559_v31 }
 0x388   :  { %v1050_v41 = vmul.f32 %v1740_v34, %v1049_v23 }
 0x389   :  { %v1065_v33 = vmul.f32 %v1742_v26, %v1064_v36  ;;  %vm1561_vm13 = vcmp.lt.s32.totalorder %v3223_v29, 32 }
 0x38a   :  { %v1744_v45 = vpop.eup %1743  ;;  %v1051_v39 = vadd.f32 %v1740_v34, %v1050_v41 }
 0x38b   :  { %v1078_v25 = vmul.f32 %v1744_v45, %v1046_v38  ;;  %v1066_v22 = vadd.f32 %v1742_v26, %v1065_v33  ;;  %v1746_v32 = vpop.eup %1745  ;;  %vm1083_vm9 = vweird.f32 %v1744_v45 }
 0x38c   :  { %v1055_v21 = vsel %vm1054_vm5, %v1740_v34, %v1051_v39  ;;  %v1086_v34 = vand.u32 2147483647, %v1046_v38  ;;  %vm1084_vm11 = vmor %vm1082_vm10, %vm1083_vm9 }
 0x38d   :  { %v1079_v19 = vsub.f32 1.0, %v1078_v25  ;;  %v1060_v23 = vsel %vm1057_vm7, %v1059_v28, %v1055_v21  ;;  %v1070_v30 = vsel %vm1069_vm6, %v1742_v26, %v1066_v22 }
 0x38e   :  { %v1075_v36 = vsel %vm1072_vm8, %v1074_v43, %v1070_v30  ;;  %v1094_v27 = vmul.f32 %v1746_v32, %v1060_v23  ;;  %vm1087_vm12 = vcmp.eq.f32.partialorder %v1086_v34, 8.507059e+37  ;;  %v3665_v32 = vld [vmem:[#allocation49_spill] sm:$0xff] }
 0x38f   :  { %v1080_v18 = vmul.f32 %v1744_v45, %v1079_v19  ;;  %v1093_v41 = vmul.f32 %v1075_v36, %v3142_v44 }
 0x391   :  { %v3220_v35 = vadd.f32 %v1094_v27, %v1093_v41  ;;  %v1081_v17 = vadd.f32 %v1744_v45, %v1080_v18 }
 0x393   :  { %1747 = vtanh.f32 %v3220_v35  ;;  %v1085_v22 = vsel %vm1084_vm11, %v1744_v45, %v1081_v17 }
 0x394   :  { %v1090_v19 = vsel %vm1087_vm12, %v1089_v37, %v1085_v22 }
 0x399   :  { %v1748_v30 = vpop.eup %1747 }
 0x39a   :  { %v1097_v44 = vmul.f32 %v1748_v30, %v1090_v19 }
 0x39c   :  { %1120 = vmatmul.f32.vlgmr.msra.gmra.mxu0 %v1097_v44  ;;  %v1578_v18 = vsel %vm1561_vm13, %v3145_v20, %v1097_v44  ;;  %v1583_v27 = vsel %vm1561_vm13, %v1097_v44, %v3145_v20  ;;  %1140 = vmatmul.f32.vlgmr.msra.gmra.mxu1 %v1097_v44  ;;  %v3664_v20 = vld [vmem:[#allocation48_spill] sm:$0xff] }
 0x39d   :  { %1663 = vst [vmem:[%s3363_s4 + $0x18] sm:$0xff] %v1578_v18  ;;  %1160 = vmatmul.f32.vlgmr.msra.gmra.mxu2 %v1097_v44  ;;  %1180 = vmatmul.f32.vlgmr.msra.gmra.mxu3 %v1097_v44 }
 0x39e   :  { %1664 = vst [vmem:[%s3363_s4 + $0x20] sm:$0xff] %v1583_v27  ;;  %1410 = vmatpush.msra.mxu0 %v2678_v11  ;;  %1430 = vmatpush.msra.mxu1 %v2684_v46  ;;  %v3634_v11 = vld [vmem:[#allocation5_spill] sm:$0xff]  ;;  %v3635_v46 = vld [vmem:[#allocation6_spill] sm:$0xff] }
 0x39f   :  { %1450 = vmatpush.msra.mxu2 %v2690_v47  ;;  %1470 = vmatpush.msra.mxu3 %v2696_v48  ;;  %v3636_v47 = vld [vmem:[#allocation7_spill] sm:$0xff]  ;;  %v3637_v48 = vld [vmem:[#allocation8_spill] sm:$0xff] }
 0x3a0   :  { %1411 = vmatpush.msra.mxu0 %v2702_v49  ;;  %1431 = vmatpush.msra.mxu1 %v2708_v50  ;;  %v3638_v49 = vld [vmem:[#allocation9_spill] sm:$0xff]  ;;  %v3639_v50 = vld [vmem:[#allocation10_spill] sm:$0xff] }
 0x3a1   :  { %1451 = vmatpush.msra.mxu2 %v2714_v51  ;;  %1471 = vmatpush.msra.mxu3 %v2720_v52  ;;  %v3640_v51 = vld [vmem:[#allocation11_spill] sm:$0xff]  ;;  %v3641_v52 = vld [vmem:[#allocation12_spill] sm:$0xff] }
 0x3a2   :  { %1412 = vmatpush.msra.mxu0 %v2726_v53  ;;  %1432 = vmatpush.msra.mxu1 %v2732_v54  ;;  %v3642_v53 = vld [vmem:[#allocation13_spill] sm:$0xff]  ;;  %v3643_v54 = vld [vmem:[#allocation14_spill] sm:$0xff] }
 0x3a3   :  { %1452 = vmatpush.msra.mxu2 %v2738_v56  ;;  %1472 = vmatpush.msra.mxu3 %v2744_v57  ;;  %v3644_v56 = vld [vmem:[#allocation15_spill] sm:$0xff]  ;;  %v3645_v57 = vld [vmem:[#allocation16_spill] sm:$0xff] }
 0x3a4   :  { %1413 = vmatpush.msra.mxu0 %v2750_v58  ;;  %1433 = vmatpush.msra.mxu1 %v2756_v59  ;;  %v3646_v58 = vld [vmem:[#allocation17_spill] sm:$0xff]  ;;  %v3647_v59 = vld [vmem:[#allocation18_spill] sm:$0xff] }
 0x3a5   :  { %1453 = vmatpush.msra.mxu2 %v2762_v16  ;;  %1473 = vmatpush.msra.mxu3 %v2768_v5  ;;  %v3648_v16 = vld [vmem:[#allocation19_spill] sm:$0xff]  ;;  %v3649_v5 = vld [vmem:[#allocation20_spill] sm:$0xff] }
 0x3a6   :  { %1414 = vmatpush.msra.mxu0 %v2774_v13  ;;  %1434 = vmatpush.msra.mxu1 %v2780_v61  ;;  %v3650_v13 = vld [vmem:[#allocation21_spill] sm:$0xff]  ;;  %v3651_v61 = vld [vmem:[#allocation22_spill] sm:$0xff] }
 0x3a7   :  { %1454 = vmatpush.msra.mxu2 %v2786_v1  ;;  %1474 = vmatpush.msra.mxu3 %v2792_v14  ;;  %v3652_v1 = vld [vmem:[#allocation23_spill] sm:$0xff]  ;;  %v3653_v14 = vld [vmem:[#allocation24_spill] sm:$0xff] }
 0x3a8   :  { %1415 = vmatpush.msra.mxu0 %v2798_v15  ;;  %1435 = vmatpush.msra.mxu1 %v2804_v0  ;;  %v3654_v15 = vld [vmem:[#allocation25_spill] sm:$0xff]  ;;  %v3655_v0 = vld [vmem:[#allocation26_spill] sm:$0xff] }
 0x3a9   :  { %1455 = vmatpush.msra.mxu2 %v2810_v42  ;;  %1475 = vmatpush.msra.mxu3 %v2816_v2  ;;  %v3656_v42 = vld [vmem:[#allocation28_spill] sm:$0xff]  ;;  %v3657_v2 = vld [vmem:[#allocation29_spill] sm:$0xff] }
 0x3aa   :  { %1416 = vmatpush.msra.mxu0 %v2822_v60  ;;  %1436 = vmatpush.msra.mxu1 %v2828_v3  ;;  %v3658_v60 = vld [vmem:[#allocation30_spill] sm:$0xff]  ;;  %v3659_v3 = vld [vmem:[#allocation31_spill] sm:$0xff] }
 0x3ab   :  { %1456 = vmatpush.msra.mxu2 %v2834_v4  ;;  %1476 = vmatpush.msra.mxu3 %v2840_v7  ;;  %v3660_v4 = vld [vmem:[#allocation32_spill] sm:$0xff]  ;;  %v3661_v7 = vld [vmem:[#allocation33_spill] sm:$0xff] }
 0x3ac   :  { %1417 = vmatpush.msra.mxu0 %v2846_v8  ;;  %1437 = vmatpush.msra.mxu1 %v2852_v55 }
 0x3ad   :  { %1457 = vmatpush.msra.mxu2 %v2858_v63  ;;  %1477 = vmatpush.msra.mxu3 %v2864_v6  ;;  %v3662_v63 = vld [vmem:[#allocation46_spill] sm:$0xff] }
 0x3ae   :  { %1418 = vmatpush.msra.mxu0 %v2870_v62  ;;  %1438 = vmatpush.msra.mxu1 %v2876_v10  ;;  %v3663_v62 = vld [vmem:[#allocation47_spill] sm:$0xff] }
 0x3af   :  { %1458 = vmatpush.msra.mxu2 %v2882_v12  ;;  %1478 = vmatpush.msra.mxu3 %v2888_v9 }
 0x3b0   :  { %1419 = vmatpush.msra.mxu0 %v3634_v11  ;;  %1439 = vmatpush.msra.mxu1 %v3635_v46 }
 0x3b1   :  { %1459 = vmatpush.msra.mxu2 %v3636_v47  ;;  %1479 = vmatpush.msra.mxu3 %v3637_v48 }
 0x3b2   :  { %1420 = vmatpush.msra.mxu0 %v3638_v49  ;;  %1440 = vmatpush.msra.mxu1 %v3639_v50 }
 0x3b3   :  { %1460 = vmatpush.msra.mxu2 %v3640_v51  ;;  %1480 = vmatpush.msra.mxu3 %v3641_v52 }
 0x3b4   :  { %1421 = vmatpush.msra.mxu0 %v3642_v53  ;;  %1441 = vmatpush.msra.mxu1 %v3643_v54 }
 0x3b5   :  { %1461 = vmatpush.msra.mxu2 %v3644_v56  ;;  %1481 = vmatpush.msra.mxu3 %v3645_v57 }
 0x3b6   :  { %1422 = vmatpush.msra.mxu0 %v3646_v58  ;;  %1442 = vmatpush.msra.mxu1 %v3647_v59 }
 0x3b7   :  { %1462 = vmatpush.msra.mxu2 %v3648_v16  ;;  %1482 = vmatpush.msra.mxu3 %v3649_v5 }
 0x3b8   :  { %1423 = vmatpush.msra.mxu0 %v3650_v13  ;;  %1443 = vmatpush.msra.mxu1 %v3651_v61 }
 0x3b9   :  { %1463 = vmatpush.msra.mxu2 %v3652_v1  ;;  %1483 = vmatpush.msra.mxu3 %v3653_v14 }
 0x3ba   :  { %1424 = vmatpush.msra.mxu0 %v3654_v15  ;;  %1444 = vmatpush.msra.mxu1 %v3655_v0 }
 0x3bb   :  { %1464 = vmatpush.msra.mxu2 %v3656_v42  ;;  %1484 = vmatpush.msra.mxu3 %v3657_v2  ;;  %v3666_v2 = vld [vmem:[#allocation27_spill] sm:$0xff] }
 0x3bc   :  { %1425 = vmatpush.msra.mxu0 %v3658_v60  ;;  %1445 = vmatpush.msra.mxu1 %v3659_v3 }
 0x3bd   :  { %1465 = vmatpush.msra.mxu2 %v3660_v4  ;;  %1485 = vmatpush.msra.mxu3 %v3661_v7  ;;  %v3667_v7 = vld [vmem:[#allocation50_spill] sm:$0xff] }
 0x419   :  { %v1121_v8 = vpop.f32.mrf.mxu0  ;;  %v1141_v55 = vpop.f32.mrf.mxu1 }
 0x41a   :  { %v1184_v6 = vadd.f32 %v1121_v8, %v3662_v63  ;;  %v1185_v10 = vadd.f32 %v1141_v55, %v3663_v62  ;;  %v3668_v55 = vld [vmem:[#allocation51_spill] sm:$0xff] }
 0x41c   :  { %v1652_v12 = vmul.f32 -1.442695, %v1184_v6  ;;  %v1653_v9 = vmul.f32 -1.442695, %v1185_v10 }
 0x41e   :  { %1749 = vpow2.f32 %v1652_v12  ;;  %v3669_v12 = vld [vmem:[#allocation52_spill] sm:$0xff] }
 0x41f   :  { %1751 = vpow2.f32 %v1653_v9 }
 0x420   :  { %v1161_v17 = vpop.f32.mrf.mxu2  ;;  %v1181_v25 = vpop.f32.mrf.mxu3 }
 0x421   :  { %v1186_v45 = vadd.f32 %v1161_v17, %v3664_v20  ;;  %v1187_v23 = vadd.f32 %v1181_v25, %v3665_v32 }
 0x423   :  { %v1654_v38 = vmul.f32 -1.442695, %v1186_v45 }
 0x424   :  { %v1750_v26 = vpop.eup %1749 }
 0x425   :  { %v1752_v24 = vpop.eup %1751  ;;  %v1197_v33 = vadd.f32 1.0, %v1750_v26  ;;  %1753 = vpow2.f32 %v1654_v38 }
 0x426   :  { %v1198_v39 = vadd.f32 1.0, %v1752_v24 }
 0x427   :  { %1755 = vrcp.f32 %v1197_v33  ;;  %v1211_v22 = vand.u32 2147483648, %v1197_v33  ;;  %v1209_v19 = vand.u32 2147483647, %v1197_v33  ;;  %vm1205_vm0 = vweird.f32 %v1197_v33 }
 0x428   :  { %1757 = vrcp.f32 %v1198_v39  ;;  %v1226_v37 = vand.u32 2147483648, %v1198_v39  ;;  %v1224_v18 = vand.u32 2147483647, %v1198_v39  ;;  %vm1220_vm1 = vweird.f32 %v1198_v39 }
 0x429   :  { %v1212_v47 = vor.u32 1.1754944e-38, %v1211_v22  ;;  %vm1210_vm4 = vcmp.eq.f32.partialorder %v1209_v19, 8.507059e+37 }
 0x42a   :  { %v1227_v49 = vor.u32 1.1754944e-38, %v1226_v37  ;;  %vm1225_vm5 = vcmp.eq.f32.partialorder %v1224_v18, 8.507059e+37 }
 0x42b   :  { %v1754_v28 = vpop.eup %1753 }
 0x42c   :  { %v1199_v43 = vadd.f32 1.0, %v1754_v28  ;;  %v3670_v28 = vld [vmem:[#allocation53_spill] sm:$0xff] }
 0x42d   :  { %v1756_v21 = vpop.eup %1755 }
 0x42e   :  { %v1758_v36 = vpop.eup %1757  ;;  %v1201_v41 = vmul.f32 %v1756_v21, %v1197_v33  ;;  %1759 = vrcp.f32 %v1199_v43  ;;  %vm1206_vm14 = vweird.f32 %v1756_v21  ;;  %v1241_v13 = vand.u32 2147483648, %v1199_v43 }
 0x42f   :  { %v1216_v31 = vmul.f32 %v1758_v36, %v1198_v39  ;;  %1761 = vtanh.f32 %v1187_v23  ;;  %vm1221_vm15 = vweird.f32 %v1758_v36  ;;  %vm1207_vm2 = vmor %vm1205_vm0, %vm1206_vm14  ;;  %vm1235_vm7 = vweird.f32 %v1199_v43 }
 0x430   :  { %v1202_v40 = vsub.f32 1.0, %v1201_v41  ;;  %vm1222_vm3 = vmor %vm1220_vm1, %vm1221_vm15  ;;  %v1239_v61 = vand.u32 2147483647, %v1199_v43  ;;  %v1242_v14 = vor.u32 1.1754944e-38, %v1241_v13 }
 0x431   :  { %v1217_v34 = vsub.f32 1.0, %v1216_v31 }
 0x432   :  { %v1203_v30 = vmul.f32 %v1756_v21, %v1202_v40  ;;  %vm1240_vm9 = vcmp.eq.f32.partialorder %v1239_v61, 8.507059e+37 }
 0x433   :  { %v1218_v44 = vmul.f32 %v1758_v36, %v1217_v34 }
 0x434   :  { %v1760_v27 = vpop.eup %1759  ;;  %v1204_v11 = vadd.f32 %v1756_v21, %v1203_v30 }
 0x435   :  { %v1231_v46 = vmul.f32 %v1760_v27, %v1199_v43  ;;  %v1219_v48 = vadd.f32 %v1758_v36, %v1218_v44  ;;  %v1762_v51 = vpop.eup %1761  ;;  %vm1236_vm6 = vweird.f32 %v1760_v27 }
 0x436   :  { %v1208_v50 = vsel %vm1207_vm2, %v1756_v21, %v1204_v11  ;;  %vm1237_vm8 = vmor %vm1235_vm7, %vm1236_vm6 }
 0x437   :  { %v1232_v52 = vsub.f32 1.0, %v1231_v46  ;;  %v1213_v53 = vsel %vm1210_vm4, %v1212_v47, %v1208_v50  ;;  %v1223_v54 = vsel %vm1222_vm3, %v1758_v36, %v1219_v48 }
 0x438   :  { %v1228_v56 = vsel %vm1225_vm5, %v1227_v49, %v1223_v54  ;;  %v1247_v57 = vmul.f32 %v1762_v51, %v1213_v53 }
 0x439   :  { %v1233_v58 = vmul.f32 %v1760_v27, %v1232_v52  ;;  %v1246_v59 = vmul.f32 %v1228_v56, %v3220_v35 }
 0x43b   :  { %v3307_v16 = vadd.f32 %v1247_v57, %v1246_v59  ;;  %v1234_v5 = vadd.f32 %v1760_v27, %v1233_v58 }
 0x43d   :  { %1763 = vtanh.f32 %v3307_v16  ;;  %v1238_v1 = vsel %vm1237_vm8, %v1760_v27, %v1234_v5 }
 0x43e   :  { %v1243_v0 = vsel %vm1240_vm9, %v1242_v14, %v1238_v1 }
 0x443   :  { %v1764_v15 = vpop.eup %1763 }
 0x444   :  { %v1250_v42 = vmul.f32 %v1764_v15, %v1243_v0  ;;  %v3671_v0 = vld [vmem:[#allocation4_spill] sm:$0xff] }
 0x446   :  { %1273 = vmatmul.f32.vlgmr.msrb.gmra.mxu0 %v1250_v42  ;;  %v1573_v35 = vsel %vm1561_vm13, %v3666_v2, %v1250_v42  ;;  %v1588_v60 = vsel %vm1561_vm13, %v1250_v42, %v3666_v2  ;;  %1293 = vmatmul.f32.vlgmr.msrb.gmra.mxu1 %v1250_v42 }
 0x447   :  { %1662 = vst [vmem:[%s3363_s4 + $0x10] sm:$0xff] %v1573_v35  ;;  %1313 = vmatmul.f32.vlgmr.msrb.gmra.mxu2 %v1250_v42  ;;  %1333 = vmatmul.f32.vlgmr.msrb.gmra.mxu3 %v1250_v42 }
 0x448   :  { %1665 = vst [vmem:[%s3363_s4 + $0x28] sm:$0xff] %v1588_v60  ;;  %v3672_v60 = vld [vmem:[#allocation54_spill] sm:$0xff] }
 0x4c3   :  { %v1274_v3 = vpop.f32.mrf.mxu0  ;;  %v1294_v4 = vpop.f32.mrf.mxu1 }
 0x4c4   :  { %v1337_v8 = vadd.f32 %v1274_v3, %v3667_v7  ;;  %v1338_v63 = vadd.f32 %v1294_v4, %v3668_v55  ;;  %v3673_v4 = vld [vmem:[#allocation55_spill] sm:$0xff] }
 0x4c6   :  { %v1655_v6 = vmul.f32 -1.442695, %v1337_v8  ;;  %v1656_v62 = vmul.f32 -1.442695, %v1338_v63 }
 0x4c8   :  { %1765 = vpow2.f32 %v1655_v6  ;;  %v3674_v6 = vld [vmem:[#allocation56_spill] sm:$0xff] }
 0x4c9   :  { %1767 = vpow2.f32 %v1656_v62 }
 0x4ca   :  { %v1314_v10 = vpop.f32.mrf.mxu2  ;;  %v1334_v24 = vpop.f32.mrf.mxu3 }
 0x4cb   :  { %v1339_v9 = vadd.f32 %v1314_v10, %v3669_v12  ;;  %v1340_v43 = vadd.f32 %v1334_v24, %v3670_v28 }
 0x4cd   :  { %v1657_v17 = vmul.f32 -1.442695, %v1339_v9 }
 0x4ce   :  { %v1766_v20 = vpop.eup %1765 }
 0x4cf   :  { %v1768_v45 = vpop.eup %1767  ;;  %v1350_v38 = vadd.f32 1.0, %v1766_v20  ;;  %1769 = vpow2.f32 %v1657_v17 }
 0x4d0   :  { %v1351_v26 = vadd.f32 1.0, %v1768_v45 }
 0x4d1   :  { %1771 = vrcp.f32 %v1350_v38  ;;  %v1364_v31 = vand.u32 2147483648, %v1350_v38  ;;  %v1362_v22 = vand.u32 2147483647, %v1350_v38  ;;  %vm1358_vm12 = vweird.f32 %v1350_v38 }
 0x4d2   :  { %1773 = vrcp.f32 %v1351_v26  ;;  %v1379_v40 = vand.u32 2147483648, %v1351_v26  ;;  %v1377_v30 = vand.u32 2147483647, %v1351_v26  ;;  %vm1373_vm14 = vweird.f32 %v1351_v26 }
 0x4d3   :  { %v1365_v27 = vor.u32 1.1754944e-38, %v1364_v31  ;;  %vm1363_vm1 = vcmp.eq.f32.partialorder %v1362_v22, 8.507059e+37 }
 0x4d4   :  { %v1380_v46 = vor.u32 1.1754944e-38, %v1379_v40  ;;  %vm1378_vm2 = vcmp.eq.f32.partialorder %v1377_v30, 8.507059e+37 }
 0x4d5   :  { %v1770_v33 = vpop.eup %1769 }
 0x4d6   :  { %v1352_v39 = vadd.f32 1.0, %v1770_v33  ;;  %v3675_v33 = vld [vmem:[#allocation57_spill] sm:$0xff] }
 0x4d7   :  { %v1772_v25 = vpop.eup %1771 }
 0x4d8   :  { %v1774_v21 = vpop.eup %1773  ;;  %v1354_v32 = vmul.f32 %v1772_v25, %v1350_v38  ;;  %1775 = vrcp.f32 %v1352_v39  ;;  %vm1359_vm10 = vweird.f32 %v1772_v25  ;;  %v1394_v59 = vand.u32 2147483648, %v1352_v39 }
 0x4d9   :  { %v1369_v23 = vmul.f32 %v1774_v21, %v1351_v26  ;;  %1777 = vtanh.f32 %v1340_v43  ;;  %vm1374_vm11 = vweird.f32 %v1774_v21  ;;  %vm1360_vm15 = vmor %vm1358_vm12, %vm1359_vm10  ;;  %vm1388_vm4 = vweird.f32 %v1352_v39 }
 0x4da   :  { %v1355_v36 = vsub.f32 1.0, %v1354_v32  ;;  %vm1375_vm0 = vmor %vm1373_vm14, %vm1374_vm11  ;;  %v1392_v5 = vand.u32 2147483647, %v1352_v39  ;;  %v1395_v61 = vor.u32 1.1754944e-38, %v1394_v59 }
 0x4db   :  { %v1370_v41 = vsub.f32 1.0, %v1369_v23 }
 0x4dc   :  { %v1356_v34 = vmul.f32 %v1772_v25, %v1355_v36  ;;  %vm1393_vm6 = vcmp.eq.f32.partialorder %v1392_v5, 8.507059e+37 }
 0x4dd   :  { %v1371_v37 = vmul.f32 %v1774_v21, %v1370_v41 }
 0x4de   :  { %v1776_v19 = vpop.eup %1775  ;;  %v1357_v44 = vadd.f32 %v1772_v25, %v1356_v34 }
 0x4df   :  { %v1384_v18 = vmul.f32 %v1776_v19, %v1352_v39  ;;  %v1372_v11 = vadd.f32 %v1774_v21, %v1371_v37  ;;  %v1778_v48 = vpop.eup %1777  ;;  %vm1389_vm3 = vweird.f32 %v1776_v19 }
 0x4e0   :  { %v1361_v47 = vsel %vm1360_vm15, %v1772_v25, %v1357_v44  ;;  %vm1390_vm5 = vmor %vm1388_vm4, %vm1389_vm3 }
 0x4e1   :  { %v1385_v49 = vsub.f32 1.0, %v1384_v18  ;;  %v1366_v50 = vsel %vm1363_vm1, %v1365_v27, %v1361_v47  ;;  %v1376_v51 = vsel %vm1375_vm0, %v1774_v21, %v1372_v11 }
 0x4e2   :  { %v1381_v52 = vsel %vm1378_vm2, %v1380_v46, %v1376_v51  ;;  %v1400_v53 = vmul.f32 %v1778_v48, %v1366_v50 }
 0x4e3   :  { %v1386_v54 = vmul.f32 %v1776_v19, %v1385_v49  ;;  %v1399_v56 = vmul.f32 %v1381_v52, %v3307_v16 }
 0x4e5   :  { %v3327_v57 = vadd.f32 %v1400_v53, %v1399_v56  ;;  %v1387_v58 = vadd.f32 %v1776_v19, %v1386_v54 }
 0x4e7   :  { %1779 = vtanh.f32 %v3327_v57  ;;  %v1391_v13 = vsel %vm1390_vm5, %v1776_v19, %v1387_v58 }
 0x4e8   :  { %v1396_v14 = vsel %vm1393_vm6, %v1395_v61, %v1391_v13 }
 0x4ed   :  { %v1780_v1 = vpop.eup %1779 }
 0x4ee   :  { %v1403_v15 = vmul.f32 %v1780_v1, %v1396_v14  ;;  %v3676_v14 = vld [vmem:[#allocation58_spill] sm:$0xff] }
 0x4f0   :  { %1426 = vmatmul.f32.vlgmr.msra.gmra.mxu0 %v1403_v15  ;;  %v1568_v16 = vsel %vm1561_vm13, %v3671_v0, %v1403_v15  ;;  %v1593_v42 = vsel %vm1561_vm13, %v1403_v15, %v3671_v0  ;;  %1446 = vmatmul.f32.vlgmr.msra.gmra.mxu1 %v1403_v15 }
 0x4f1   :  { %1661 = vst [vmem:[%s3363_s4 + $0x8] sm:$0xff] %v1568_v16  ;;  %1466 = vmatmul.f32.vlgmr.msra.gmra.mxu2 %v1403_v15  ;;  %1486 = vmatmul.f32.vlgmr.msra.gmra.mxu3 %v1403_v15 }
 0x4f2   :  { %1666 = vst [vmem:[%s3363_s4 + $0x30] sm:$0xff] %v1593_v42 }
 0x56d   :  { %v1427_v2 = vpop.f32.mrf.mxu0  ;;  %v1447_v35 = vpop.f32.mrf.mxu1 }
 0x56e   :  { %v1490_v3 = vadd.f32 %v1427_v2, %v3672_v60  ;;  %v1491_v7 = vadd.f32 %v1447_v35, %v3673_v4 }
 0x570   :  { %v1658_v8 = vmul.f32 -1.442695, %v1490_v3  ;;  %v1659_v55 = vmul.f32 -1.442695, %v1491_v7 }
 0x572   :  { %1781 = vpow2.f32 %v1658_v8 }
 0x573   :  { %1783 = vpow2.f32 %v1659_v55 }
 0x574   :  { %v1467_v63 = vpop.f32.mrf.mxu2  ;;  %v1487_v45 = vpop.f32.mrf.mxu3 }
 0x575   :  { %v1492_v62 = vadd.f32 %v1467_v63, %v3674_v6  ;;  %v1493_v39 = vadd.f32 %v1487_v45, %v3675_v33 }
 0x577   :  { %v1660_v10 = vmul.f32 -1.442695, %v1492_v62 }
 0x578   :  { %v1782_v12 = vpop.eup %1781 }
 0x579   :  { %v1784_v9 = vpop.eup %1783  ;;  %v1503_v17 = vadd.f32 1.0, %v1782_v12  ;;  %1785 = vpow2.f32 %v1660_v10 }
 0x57a   :  { %v1504_v20 = vadd.f32 1.0, %v1784_v9 }
 0x57b   :  { %1787 = vrcp.f32 %v1503_v17  ;;  %v1517_v23 = vand.u32 2147483648, %v1503_v17  ;;  %v1515_v31 = vand.u32 2147483647, %v1503_v17  ;;  %vm1511_vm9 = vweird.f32 %v1503_v17 }
 0x57c   :  { %1789 = vrcp.f32 %v1504_v20  ;;  %v1532_v36 = vand.u32 2147483648, %v1504_v20  ;;  %v1530_v34 = vand.u32 2147483647, %v1504_v20  ;;  %vm1526_vm10 = vweird.f32 %v1504_v20 }
 0x57d   :  { %v1518_v19 = vor.u32 1.1754944e-38, %v1517_v23  ;;  %vm1516_vm14 = vcmp.eq.f32.partialorder %v1515_v31, 8.507059e+37 }
 0x57e   :  { %v1533_v18 = vor.u32 1.1754944e-38, %v1532_v36  ;;  %vm1531_vm15 = vcmp.eq.f32.partialorder %v1530_v34, 8.507059e+37 }
 0x57f   :  { %v1786_v38 = vpop.eup %1785 }
 0x580   :  { %v1505_v26 = vadd.f32 1.0, %v1786_v38 }
 0x581   :  { %v1788_v24 = vpop.eup %1787 }
 0x582   :  { %v1790_v25 = vpop.eup %1789  ;;  %v1507_v28 = vmul.f32 %v1788_v24, %v1503_v17  ;;  %1791 = vrcp.f32 %v1505_v26  ;;  %vm1512_vm7 = vweird.f32 %v1788_v24  ;;  %v1547_v56 = vand.u32 2147483648, %v1505_v26 }
 0x583   :  { %v1522_v43 = vmul.f32 %v1790_v25, %v1504_v20  ;;  %1793 = vtanh.f32 %v1493_v39  ;;  %vm1527_vm8 = vweird.f32 %v1790_v25  ;;  %vm1513_vm11 = vmor %vm1511_vm9, %vm1512_vm7  ;;  %vm1541_vm1 = vweird.f32 %v1505_v26 }
 0x584   :  { %v1508_v21 = vsub.f32 1.0, %v1507_v28  ;;  %vm1528_vm12 = vmor %vm1526_vm10, %vm1527_vm8  ;;  %v1545_v58 = vand.u32 2147483647, %v1505_v26  ;;  %v1548_v5 = vor.u32 1.1754944e-38, %v1547_v56 }
 0x585   :  { %v1523_v32 = vsub.f32 1.0, %v1522_v43 }
 0x586   :  { %v1509_v41 = vmul.f32 %v1788_v24, %v1508_v21  ;;  %vm1546_vm3 = vcmp.eq.f32.partialorder %v1545_v58, 8.507059e+37 }
 0x587   :  { %v1524_v40 = vmul.f32 %v1790_v25, %v1523_v32 }
 0x588   :  { %v1792_v22 = vpop.eup %1791  ;;  %v1510_v37 = vadd.f32 %v1788_v24, %v1509_v41 }
 0x589   :  { %v1537_v30 = vmul.f32 %v1792_v22, %v1505_v26  ;;  %v1525_v44 = vadd.f32 %v1790_v25, %v1524_v40  ;;  %v1794_v11 = vpop.eup %1793  ;;  %vm1542_vm0 = vweird.f32 %v1792_v22 }
 0x58a   :  { %v1514_v27 = vsel %vm1513_vm11, %v1788_v24, %v1510_v37  ;;  %vm1543_vm2 = vmor %vm1541_vm1, %vm1542_vm0 }
 0x58b   :  { %v1538_v46 = vsub.f32 1.0, %v1537_v30  ;;  %v1519_v47 = vsel %vm1516_vm14, %v1518_v19, %v1514_v27  ;;  %v1529_v48 = vsel %vm1528_vm12, %v1790_v25, %v1525_v44 }
 0x58c   :  { %v1534_v49 = vsel %vm1531_vm15, %v1533_v18, %v1529_v48  ;;  %v1553_v50 = vmul.f32 %v1794_v11, %v1519_v47 }
 0x58d   :  { %v1539_v51 = vmul.f32 %v1792_v22, %v1538_v46  ;;  %v1552_v52 = vmul.f32 %v1534_v49, %v3327_v57 }
 0x58f   :  { %v1554_v53 = vadd.f32 %v1553_v50, %v1552_v52  ;;  %v1540_v54 = vadd.f32 %v1792_v22, %v1539_v51 }
 0x591   :  { %1795 = vtanh.f32 %v1554_v53  ;;  %v1544_v59 = vsel %vm1543_vm2, %v1792_v22, %v1540_v54 }
 0x592   :  { %v1549_v61 = vsel %vm1546_vm3, %v1548_v5, %v1544_v59 }
 0x597   :  { %v1796_v13 = vpop.eup %1795 }
 0x598   :  { %v1556_v1 = vmul.f32 %v1796_v13, %v1549_v61 }
 0x59a   :  { %v1564_v15 = vsel %vm1561_vm13, %v3676_v14, %v1556_v1  ;;  %v1598_v57 = vsel %vm1561_vm13, %v1556_v1, %v3676_v14 }
 0x59b   :  { %1565 = vst [vmem:[%s3363_s4] sm:$0xff] %v1564_v15 }
 0x59c   :  { %1667 = vst [vmem:[%s3363_s4 + $0x38] sm:$0xff] %v1598_v57 }

</bundles_post_ra>
